<compile_context>
chip_gen: v7x
topology: tpu7x:2x2x1
jax: 0.10.0
libtpu: 0.0.40
codegen_flags: <defaults>
</compile_context>

<pallas_src>
import functools
import math

import jax
import jax.numpy as jnp
from jax import lax
from jax.experimental import pallas as pl
from jax.experimental.pallas import tpu as pltpu


_VMEM_LIMIT = 32 * 1024 * 1024  # explicit scoped-VMEM budget (safe on v5e/v6e/v7x)


# ---------------------------------------------------------------------------
# helpers
# ---------------------------------------------------------------------------
def _choose_row_tile(rows: int, row_bytes: int, max_tile_bytes: int = 4 << 20) -> int:
    """Largest row-tile that divides `rows`, is a multiple of 8 (or == rows) and
    keeps a tile under `max_tile_bytes`.  Double-buffered tiles then stay well
    below the scoped-VMEM limit and v7x's 64 MiB physical VMEM."""
    if rows * row_bytes <= max_tile_bytes:
        return rows
    cap = max(1, max_tile_bytes // max(row_bytes, 1))
    best = None
    for t in range(8, min(rows, cap) + 1, 8):
        if rows % t == 0:
            best = t
    return best if best is not None else rows


def _pick_dim_tile(dim: int, preferred) -> int:
    """Pick the largest preferred tile that divides `dim`; otherwise keep full."""
    for t in preferred:
        if dim >= t and dim % t == 0:
            return t
    return dim


def _build_positional_embeddings(embedding_dim: int, sequence_length: int) -> jnp.ndarray:
    """Sinusoidal PE table, identical to the PyTorch PositionalEmbedding.__init__."""
    position = jnp.arange(0, sequence_length, dtype=jnp.float32)[:, None]
    div_term = jnp.exp(
        jnp.arange(0, embedding_dim, 2, dtype=jnp.float32)
        * (-math.log(10000.0) / embedding_dim)
    )
    pe = jnp.zeros((sequence_length, embedding_dim), dtype=jnp.float32)
    pe = pe.at[:, 0::2].set(jnp.sin(position * div_term))
    pe = pe.at[:, 1::2].set(jnp.cos(position * div_term))
    return pe


def create_decoder_mask(tgt_seq: jnp.ndarray, pad_token_id: int = 0) -> jnp.ndarray:
    """Causal + padding mask, shape (B, 1, S, S), 1 = attend / 0 = masked."""
    B, S = tgt_seq.shape
    pad = (tgt_seq != pad_token_id).astype(jnp.int32)[:, None, None, :]      # (B,1,1,S)
    causal = jnp.tril(jnp.ones((S, S), dtype=jnp.int32))[None, None, :, :]   # (1,1,S,S)
    return pad * causal                                                       # (B,1,S,S)


# ---------------------------------------------------------------------------
# Pallas kernels
# ---------------------------------------------------------------------------
def _pe_add_kernel(x_ref, pe_ref, o_ref):
    # Batch dim squeezed out by the BlockSpec -> rank-matched 2D add, no broadcast.
    o_ref[...] = x_ref[...] + pe_ref[...]


def _linear_kernel(activation, x_ref, w_ref, b_ref, o_ref, acc_ref):
    """M/N/K-tiled matmul with f32 accumulator; bias (+ optional ReLU) epilogue."""
    k = pl.program_id(2)

    @pl.when(k == 0)
    def _():
        acc_ref[...] = jnp.zeros_like(acc_ref)

    acc_ref[...] += jnp.dot(x_ref[...], w_ref[...], preferred_element_type=jnp.float32)

    @pl.when(k == pl.num_programs(2) - 1)
    def _():
        r = acc_ref[...] + b_ref[...].astype(jnp.float32)
        if activation == "relu":
            r = jnp.maximum(r, 0.0)
        o_ref[...] = r.astype(o_ref.dtype)


def _linear_add_ln_kernel(x_ref, w_ref, b_ref, res_ref, g_ref, be_ref, o_ref, acc_ref):
    """Fused: LayerNorm(residual + (x @ W + b)).  Full D row kept in the tile."""
    k = pl.program_id(1)

    @pl.when(k == 0)
    def _():
        acc_ref[...] = jnp.zeros_like(acc_ref)

    acc_ref[...] += jnp.dot(x_ref[...], w_ref[...], preferred_element_type=jnp.float32)

    @pl.when(k == pl.num_programs(1) - 1)
    def _():
        s = acc_ref[...] + b_ref[...].astype(jnp.float32) + res_ref[...].astype(jnp.float32)
        mean = jnp.mean(s, axis=-1, keepdims=True)
        c = s - mean
        var = jnp.mean(c * c, axis=-1, keepdims=True)
        n = c * lax.rsqrt(var + 1e-5)
        o_ref[...] = (n * g_ref[...] + be_ref[...]).astype(o_ref.dtype)


def _attention_kernel(h, d, scale, k_off, v_off, q_ref, kv_ref, bias_ref, o_ref):
    """Multi-head attention for one (batch, q-tile) block.

    q_ref:    (tS, Dq)  with Q occupying columns [0, h*d)
    kv_ref:   (Skv, Dkv) with K at columns [k_off, k_off+h*d) and V at [v_off, ...)
    bias_ref: (tS, Skv)  additive f32 mask bias (0 / -1e30)
    o_ref:    (tS, h*d)  lane-dense output store
    """
    D = h * d
    qfull = q_ref[...]
    kvfull = kv_ref[...]
    bias = bias_ref[...].astype(jnp.float32)
    outs = []
    for head in range(h):
        qh = qfull[:, head * d:(head + 1) * d]
        kh = kvfull[:, k_off + head * d:k_off + (head + 1) * d]
        vh = kvfull[:, v_off + head * d:v_off + (head + 1) * d]
        s = lax.dot_general(qh, kh, (((1,), (1,)), ((), ())),
                            preferred_element_type=jnp.float32) * scale + bias
        m = jnp.max(s, axis=-1, keepdims=True)
        p = jnp.exp(s - m)
        l = jnp.sum(p, axis=-1, keepdims=True)
        p = p * pl.reciprocal(l, approx=True)
        outs.append(jnp.dot(p.astype(vh.dtype), vh, preferred_element_type=jnp.float32))
    o_ref[...] = jnp.concatenate(outs, axis=-1).astype(o_ref.dtype)


# ---------------------------------------------------------------------------
# Pallas wrappers
# ---------------------------------------------------------------------------
def positional_embedding_forward(x: jnp.ndarray, pe_table: jnp.ndarray) -> jnp.ndarray:
    """x: (B, S, D); pe_table: (S_max, D) with S <= S_max."""
    B, S, D = x.shape
    pe = pe_table[:S].astype(x.dtype)          # slice + dtype-match in plain JAX

    # Lane-dense 2D view: last dim a multiple of 128 whenever possible.
    if D % 128 == 0:
        rows, cols = S, D
    elif (S * D) % 128 == 0:
        rows, cols = (S * D) // 128, 128
    else:
        rows, cols = S, D                      # correct fallback (masked stores)
    x2 = x.reshape(B, rows, cols)
    pe2 = pe.reshape(rows, cols)

    itemsize = x2.dtype.itemsize
    tR = _choose_row_tile(rows, cols * itemsize * 3, max_tile_bytes=6 << 20)

    out = pl.pallas_call(
        _pe_add_kernel,
        out_shape=jax.ShapeDtypeStruct((B, rows, cols), x2.dtype),
        grid_spec=pltpu.PrefetchScalarGridSpec(
            num_scalar_prefetch=0,
            # Sequence-tile axis outer, batch inner: the PE block index is
            # constant across the inner axis, so the PE tile is fetched once
            # per sequence tile instead of every grid step.
            grid=(rows // tR, B),
            in_specs=[
                pl.BlockSpec((None, tR, cols), lambda s, b: (b, s, 0)),
                pl.BlockSpec((tR, cols), lambda s, b: (s, 0)),
            ],
            out_specs=pl.BlockSpec((None, tR, cols), lambda s, b: (b, s, 0)),
        ),
        compiler_params=pltpu.CompilerParams(
            dimension_semantics=("parallel", "parallel"),
            vmem_limit_bytes=_VMEM_LIMIT,
        ),
        # safe: `x` is always the fresh embedding-gather temporary here
        input_output_aliases={0: 0},
        cost_estimate=pl.CostEstimate(
            flops=B * S * D,
            transcendentals=0,
            bytes_accessed=2 * B * S * D * itemsize + S * D * itemsize,
        ),
    )(x2, pe2)
    return out.reshape(B, S, D)


def linear_pallas(x2: jnp.ndarray, w: jnp.ndarray, b: jnp.ndarray, activation=None):
    """x2: (M, K), w: (K, N), b: (N,)  ->  (M, N).  M/N/K tiled, f32 accumulation."""
    M, K = x2.shape
    N = w.shape[1]
    itemsize = x2.dtype.itemsize

    tN = _pick_dim_tile(N, (512, 256, 128))          # 256-multiples feed the v6e/v7x MXU
    tK = _pick_dim_tile(K, (512, 256))
    tM = _pick_dim_tile(M, (256, 128))
    if tM == M:
        tM = _choose_row_tile(M, (tK + tN) * itemsize + tN * 4)
    # v7x has 2 TensorCores: make sure at least one "parallel" axis has >= 2 steps.
    if (M // tM) * (N // tN) == 1 and M % 16 == 0:
        tM = M // 2

    grid = (M // tM, N // tN, K // tK)
    kern = functools.partial(_linear_kernel, activation)
    flops = 2 * M * K * N
    bytes_accessed = (M * K + K * N + M * N + N) * itemsize

    return pl.pallas_call(
        kern,
        out_shape=jax.ShapeDtypeStruct((M, N), x2.dtype),
        grid_spec=pltpu.PrefetchScalarGridSpec(
            num_scalar_prefetch=0,
            grid=grid,
            in_specs=[
                pl.BlockSpec((tM, tK), lambda i, j, k: (i, k)),
                pl.BlockSpec((tK, tN), lambda i, j, k: (k, j)),
                pl.BlockSpec((1, tN), lambda i, j, k: (0, j)),
            ],
            out_specs=pl.BlockSpec((tM, tN), lambda i, j, k: (i, j)),
            scratch_shapes=[pltpu.VMEM((tM, tN), jnp.float32)],
        ),
        compiler_params=pltpu.CompilerParams(
            dimension_semantics=("parallel", "parallel", "arbitrary"),
            vmem_limit_bytes=_VMEM_LIMIT,
        ),
        cost_estimate=pl.CostEstimate(flops=flops, transcendentals=0,
                                      bytes_accessed=bytes_accessed),
    )(x2, w, b.reshape(1, N))


def linear_add_ln_pallas(x2, w, b, res2, gamma, beta):
    """LayerNorm(res2 + (x2 @ w + b)); x2: (M, K), w: (K, D), res2: (M, D)."""
    M, K = x2.shape
    N = w.shape[1]                               # == D, kept whole for the LN reduction
    itemsize = x2.dtype.itemsize

    tK = _pick_dim_tile(K, (512, 256))
    tM = _pick_dim_tile(M, (256, 128))
    if tM == M:
        tM = _choose_row_tile(M, (tK + 3 * N) * itemsize + N * 4)
    if (M // tM) == 1 and M % 16 == 0:
        tM = M // 2

    grid = (M // tM, K // tK)
    flops = 2 * M * K * N + 10 * M * N
    bytes_accessed = (M * K + K * N + 3 * M * N + 3 * N) * itemsize

    return pl.pallas_call(
        _linear_add_ln_kernel,
        out_shape=jax.ShapeDtypeStruct((M, N), x2.dtype),
        grid_spec=pltpu.PrefetchScalarGridSpec(
            num_scalar_prefetch=0,
            grid=grid,
            in_specs=[
                pl.BlockSpec((tM, tK), lambda i, k: (i, k)),
                pl.BlockSpec((tK, N), lambda i, k: (k, 0)),
                pl.BlockSpec((1, N), lambda i, k: (0, 0)),
                pl.BlockSpec((tM, N), lambda i, k: (i, 0)),
                pl.BlockSpec((1, N), lambda i, k: (0, 0)),
                pl.BlockSpec((1, N), lambda i, k: (0, 0)),
            ],
            out_specs=pl.BlockSpec((tM, N), lambda i, k: (i, 0)),
            scratch_shapes=[pltpu.VMEM((tM, N), jnp.float32)],
        ),
        compiler_params=pltpu.CompilerParams(
            dimension_semantics=("parallel", "arbitrary"),
            vmem_limit_bytes=_VMEM_LIMIT,
        ),
        cost_estimate=pl.CostEstimate(flops=flops, transcendentals=0,
                                      bytes_accessed=bytes_accessed),
    )(x2, w, b.reshape(1, N), res2, gamma.reshape(1, N), beta.reshape(1, N))


def attention_pallas(q, kv, bias, h, d, k_off, v_off):
    """q: (B, Sq, Dq) with Q in cols [0, h*d); kv: (B, Skv, Dkv) with K/V at
    k_off/v_off; bias: (B, Sq, Skv) additive f32 (0 / -1e30).  Output (B, Sq, h*d)."""
    B, Sq, Dq = q.shape
    Skv, Dkv = kv.shape[1], kv.shape[2]
    D = h * d
    itemsize = q.dtype.itemsize

    # Per-query-row footprint: q tile row + out row + f32 scores/probs per head + bias.
    row_bytes = (Dq + D) * itemsize + 2 * Skv * 4 + Skv * 4
    tS = _choose_row_tile(Sq, row_bytes, max_tile_bytes=4 << 20)

    kern = functools.partial(_attention_kernel, h, d, 1.0 / math.sqrt(d), k_off, v_off)
    flops = 4 * B * Sq * Skv * D
    bytes_accessed = (B * Sq * Dq + B * Skv * Dkv + B * Sq * D) * itemsize + B * Sq * Skv * 4

    return pl.pallas_call(
        kern,
        out_shape=jax.ShapeDtypeStruct((B, Sq, D), q.dtype),
        grid_spec=pltpu.PrefetchScalarGridSpec(
            num_scalar_prefetch=0,
            grid=(B, Sq // tS),
            in_specs=[
                pl.BlockSpec((None, tS, Dq), lambda b, i: (b, i, 0)),
                pl.BlockSpec((None, Skv, Dkv), lambda b, i: (b, 0, 0)),
                pl.BlockSpec((None, tS, Skv), lambda b, i: (b, i, 0)),
            ],
            out_specs=pl.BlockSpec((None, tS, D), lambda b, i: (b, i, 0)),
        ),
        compiler_params=pltpu.CompilerParams(
            dimension_semantics=("parallel", "parallel"),
            vmem_limit_bytes=_VMEM_LIMIT,
        ),
        cost_estimate=pl.CostEstimate(flops=flops, transcendentals=B * h * Sq * Skv,
                                      bytes_accessed=bytes_accessed),
    )(q, kv, bias)


# ---------------------------------------------------------------------------
# Decoder forward composed from Pallas kernels
# ---------------------------------------------------------------------------
def _decoder_layer_pallas(p, x, enc, src_bias, tgt_bias, h):
    B, S, D = x.shape
    Se = enc.shape[1]
    d = D // h
    M = B * S
    x2 = x.reshape(M, D)

    # --- masked self-attention: fused QKV projection, heads split inside the kernel
    qkv = linear_pallas(x2, p["Wqkv"], p["bqkv"]).reshape(B, S, 3 * D)
    ctx = attention_pallas(qkv, qkv, tgt_bias, h, d, k_off=D, v_off=2 * D)
    # Wo projection + residual + LayerNorm fused in one kernel
    out1 = linear_add_ln_pallas(ctx.reshape(M, D), p["Wo"], p["bo"],
                                x2, p["ln1_g"], p["ln1_b"])

    # --- cross-attention: fused KV projection of the encoder output
    q2 = linear_pallas(out1, p["Wq2"], p["bq2"]).reshape(B, S, D)
    kv2 = linear_pallas(enc.reshape(B * Se, D), p["Wkv2"], p["bkv2"]).reshape(B, Se, 2 * D)
    ctx2 = attention_pallas(q2, kv2, src_bias, h, d, k_off=0, v_off=D)
    out2 = linear_add_ln_pallas(ctx2.reshape(M, D), p["Wo2"], p["bo2"],
                                out1, p["ln2_g"], p["ln2_b"])

    # --- FFNN (dropout = identity); second linear fused with residual + LayerNorm
    f = linear_pallas(out2, p["ffn_w1"], p["ffn_b1"], activation="relu")
    out3 = linear_add_ln_pallas(f, p["ffn_w2"], p["ffn_b2"],
                                out2, p["ln3_g"], p["ln3_b"])
    return out3.reshape(B, S, D)


def decoder_forward_pallas(params, texts, encoder_output, *, h, src_mask=None):
    emb = params["embedding"][texts]                       # token gather (plain JAX)
    x = positional_embedding_forward(emb, params["pe"])    # Pallas PE add (dropout = identity)
    B, S, D = x.shape
    Se = encoder_output.shape[1]

    # Masks as additive f32 bias: 0 where attend, -1e30 where masked (no NaN rows).
    tgt_mask = create_decoder_mask(texts, pad_token_id=0)                    # (B,1,S,S)
    tgt_bias = jnp.where(tgt_mask[:, 0] == 0, -1e30, 0.0).astype(jnp.float32)
    if src_mask is None:
        src_bias = jnp.zeros((B, S, Se), dtype=jnp.float32)
    else:
        src_bias = jnp.where(src_mask[:, 0] == 0, -1e30, 0.0).astype(jnp.float32)

    for lp in params["layers"]:
        x = _decoder_layer_pallas(lp, x, encoder_output, src_bias, tgt_bias, h)
    logits = linear_pallas(x.reshape(B * S, D), params["final_w"], params["final_b"])
    return logits.reshape(B, S, -1)


# ---------------------------------------------------------------------------
# Pure-JAX reference (same math as the PyTorch module, eval-mode dropout)
# ---------------------------------------------------------------------------
def _add_layernorm_ref(x, y, g, b, eps=1e-5):
    s = (x + y).astype(jnp.float32)
    mean = jnp.mean(s, axis=-1, keepdims=True)
    c = s - mean
    var = jnp.mean(c * c, axis=-1, keepdims=True)
    return c * lax.rsqrt(var + eps) * g + b


def _mha_ref(xq, xkv, Wq, bq, Wk, bk, Wv, bv, Wo, bo, mask, h):
    B, Sq, D = xq.shape
    Skv = xkv.shape[1]
    d = D // h
    q = (xq @ Wq + bq).reshape(B, Sq, h, d).transpose(0, 2, 1, 3)
    k = (xkv @ Wk + bk).reshape(B, Skv, h, d).transpose(0, 2, 1, 3)
    v = (xkv @ Wv + bv).reshape(B, Skv, h, d).transpose(0, 2, 1, 3)
    s = jnp.einsum("bhqd,bhkd->bhqk", q, k) / math.sqrt(d)
    if mask is not None:
        s = jnp.where(mask == 0, -jnp.inf, s)
    p = jax.nn.softmax(s, axis=-1)
    ctx = jnp.einsum("bhqk,bhkd->bhqd", p, v).transpose(0, 2, 1, 3).reshape(B, Sq, D)
    return ctx @ Wo + bo


def _decoder_layer_ref(p, x, enc, src_mask, tgt_mask, h):
    sa = _mha_ref(x, x, p["Wq"], p["bq"], p["Wk"], p["bk"], p["Wv"], p["bv"],
                  p["Wo"], p["bo"], tgt_mask, h)
    out1 = _add_layernorm_ref(x, sa, p["ln1_g"], p["ln1_b"])
    ca = _mha_ref(out1, enc, p["Wq2"], p["bq2"], p["Wk2"], p["bk2"], p["Wv2"], p["bv2"],
                  p["Wo2"], p["bo2"], src_mask, h)
    out2 = _add_layernorm_ref(out1, ca, p["ln2_g"], p["ln2_b"])
    f = jnp.maximum(out2 @ p["ffn_w1"] + p["ffn_b1"], 0.0)
    f = f @ p["ffn_w2"] + p["ffn_b2"]
    return _add_layernorm_ref(out2, f, p["ln3_g"], p["ln3_b"])


def decoder_forward_ref(params, texts, encoder_output, *, h, src_mask=None):
    S = texts.shape[1]
    x = params["embedding"][texts] + params["pe"][:S][None, :, :]
    tgt_mask = create_decoder_mask(texts, pad_token_id=0)
    for lp in params["layers"]:
        x = _decoder_layer_ref(lp, x, encoder_output, src_mask, tgt_mask, h)
    return x @ params["final_w"] + params["final_b"]


# ---------------------------------------------------------------------------
# Parameter init
# ---------------------------------------------------------------------------
def init_decoder_params(key, num_layers, embedding_dim, vocab_size, hidden_dim):
    def dense(k, fan_in, fan_out):
        kw, kb = jax.random.split(k)
        w = jax.random.normal(kw, (fan_in, fan_out), jnp.float32) * 0.1
        b = jax.random.normal(kb, (fan_out,), jnp.float32) * 0.1
        return w, b

    keys = jax.random.split(key, 2 + num_layers)
    params = {
        "embedding": jax.random.normal(keys[0], (vocab_size, embedding_dim), jnp.float32),
        "pe": _build_positional_embeddings(embedding_dim, 1000),
        "layers": [],
    }
    params["final_w"], params["final_b"] = dense(keys[1], embedding_dim, vocab_size)
    for l in range(num_layers):
        lk = jax.random.split(keys[2 + l], 13)
        D, Hd = embedding_dim, hidden_dim
        lp = {}
        for i, name in enumerate(["q", "k", "v", "o", "q2", "k2", "v2", "o2"]):
            lp["W" + name], lp["b" + name] = dense(lk[i], D, D)
        lp["ffn_w1"], lp["ffn_b1"] = dense(lk[8], D, Hd)
        lp["ffn_w2"], lp["ffn_b2"] = dense(lk[9], Hd, D)
        for i, name in enumerate(["ln1", "ln2", "ln3"]):
            gk, bk = jax.random.split(lk[10 + i])
            lp[name + "_g"] = 1.0 + 0.1 * jax.random.normal(gk, (D,), jnp.float32)
            lp[name + "_b"] = 0.1 * jax.random.normal(bk, (D,), jnp.float32)
        # fused projection weights for the Pallas path (one-time prep, not per call)
        lp["Wqkv"] = jnp.concatenate([lp["Wq"], lp["Wk"], lp["Wv"]], axis=1)
        lp["bqkv"] = jnp.concatenate([lp["bq"], lp["bk"], lp["bv"]])
        lp["Wkv2"] = jnp.concatenate([lp["Wk2"], lp["Wv2"]], axis=1)
        lp["bkv2"] = jnp.concatenate([lp["bk2"], lp["bv2"]])
        params["layers"].append(lp)
    return params


# ---------------------------------------------------------------------------
# main
# ---------------------------------------------------------------------------
if __name__ == "__main__":
    num_layers = 2
    embedding_dim = 32
    vocab_size = 50
    hidden_dim = 64
    n_heads = 4
    batch, seq, enc_seq = 2, 8, 16

    root = jax.random.PRNGKey(0)
    k_par, k_tok, k_enc = jax.random.split(root, 3)
    params = init_decoder_params(k_par, num_layers, embedding_dim, vocab_size, hidden_dim)
    # tokens in [1, vocab) so no fully-padded rows appear under the causal+pad mask
    texts = jax.random.randint(k_tok, (batch, seq), 1, vocab_size, dtype=jnp.int32)
    encoder_output = jax.random.normal(k_enc, (batch, enc_seq, embedding_dim), jnp.float32)

    fwd = jax.jit(functools.partial(decoder_forward_pallas, h=n_heads))
    out = jax.block_until_ready(fwd(params, texts, encoder_output))

    ref = jax.block_until_ready(
        decoder_forward_ref(params, texts, encoder_output, h=n_heads))

    assert out.shape == (batch, seq, vocab_size), out.shape
    assert bool(jnp.all(jnp.isfinite(out)))
    # Loose-ish tolerance: MXU f32 matmul precision and the approx EUP reciprocal
    # differ slightly from XLA's default-precision reference dots / exact divide.
    assert jnp.allclose(out, ref, atol=2e-2, rtol=2e-2), float(jnp.max(jnp.abs(out - ref)))

    print("KERNEL_OK")
</pallas_src>

<mosaic_0001>
module attributes {stable_mosaic.version = 11 : i64} {
  func.func @_pe_add_kernel(%arg0: i32, %arg1: i32, %arg2: memref<1x2x128xf32, #tpu.memory_space<vmem>>, %arg3: memref<2x128xf32, #tpu.memory_space<vmem>>, %arg4: memref<1x2x128xf32, #tpu.memory_space<vmem>>) attributes {dimension_semantics = [#tpu.dimension_semantics<parallel>, #tpu.dimension_semantics<parallel>], iteration_bounds = array<i64: 1, 2>, scalar_prefetch = 0 : i64, scratch_operands = 0 : i64, tpu.core_type = #tpu.core_type<tc>, window_params = [{transform_indices = @transform_0, window_bounds = array<i64: 1, 2, 128>}, {transform_indices = @transform_1, window_bounds = array<i64: 2, 128>}, {transform_indices = @transform_2, window_bounds = array<i64: 1, 2, 128>}]} {
    %c0 = arith.constant 0 : index
    %c0_0 = arith.constant 0 : index
    %c0_1 = arith.constant 0 : index
    %0 = vector.load %arg2[%c0, %c0_0, %c0_1] : memref<1x2x128xf32, #tpu.memory_space<vmem>>, vector<1x2x128xf32>
    %1 = vector.shape_cast %0 : vector<1x2x128xf32> to vector<2x128xf32>
    %c0_2 = arith.constant 0 : index
    %c0_3 = arith.constant 0 : index
    %2 = vector.load %arg3[%c0_2, %c0_3] : memref<2x128xf32, #tpu.memory_space<vmem>>, vector<2x128xf32>
    %3 = arith.addf %1, %2 : vector<2x128xf32>
    %c0_4 = arith.constant 0 : index
    %c0_5 = arith.constant 0 : index
    %c0_6 = arith.constant 0 : index
    %4 = vector.load %arg4[%c0_4, %c0_5, %c0_6] : memref<1x2x128xf32, #tpu.memory_space<vmem>>, vector<1x2x128xf32>
    %5 = vector.shape_cast %4 : vector<1x2x128xf32> to vector<2x128xf32>
    %6 = vector.shape_cast %3 : vector<2x128xf32> to vector<1x2x128xf32>
    tpu.vector_store %arg4[%c0_4, %c0_5, %c0_6], %6 {strides = array<i32>} : memref<1x2x128xf32, #tpu.memory_space<vmem>>, vector<1x2x128xf32>,
    return
  }
  func.func @transform_0(%arg0: i32, %arg1: i32) -> (i32, i32, i32) {
    %c0_i32 = arith.constant 0 : i32
    %c0_i32_0 = arith.constant 0 : i32
    return %arg1, %arg0, %c0_i32 : i32, i32, i32
  }
  func.func @transform_1(%arg0: i32, %arg1: i32) -> (i32, i32) {
    %c0_i32 = arith.constant 0 : i32
    %c0_i32_0 = arith.constant 0 : i32
    return %arg0, %c0_i32 : i32, i32
  }
  func.func @transform_2(%arg0: i32, %arg1: i32) -> (i32, i32, i32) {
    %c0_i32 = arith.constant 0 : i32
    %c0_i32_0 = arith.constant 0 : i32
    return %arg1, %arg0, %c0_i32 : i32, i32, i32
  }
}

module attributes {stable_mosaic.version = 11 : i64} {
  func.func @_linear_kernel(%arg0: i32, %arg1: i32, %arg2: i32, %arg3: memref<8x32xf32, #tpu.memory_space<vmem>>, %arg4: memref<32x96xf32, #tpu.memory_space<vmem>>, %arg5: memref<1x96xf32, #tpu.memory_space<vmem>>, %arg6: memref<8x96xf32, #tpu.memory_space<vmem>>, %arg7: memref<8x96xf32, #tpu.memory_space<vmem>>) attributes {dimension_semantics = [#tpu.dimension_semantics<parallel>, #tpu.dimension_semantics<parallel>, #tpu.dimension_semantics<arbitrary>], iteration_bounds = array<i64: 2, 1, 1>, scalar_prefetch = 0 : i64, scratch_operands = 1 : i64, tpu.core_type = #tpu.core_type<tc>, window_params = [{transform_indices = @transform_0, window_bounds = array<i64: 8, 32>}, {transform_indices = @transform_1, window_bounds = array<i64: 32, 96>}, {transform_indices = @transform_2, window_bounds = array<i64: 1, 96>}, {transform_indices = @transform_3, window_bounds = array<i64: 8, 96>}]} {
    %c0_i32 = arith.constant 0 : i32
    %0 = arith.cmpi eq, %arg2, %c0_i32 : i32
    %1 = arith.extui %0 : i1 to i32
    %c0_i32_0 = arith.constant 0 : i32
    %2 = arith.cmpi ne, %1, %c0_i32_0 : i32
    scf.if %2 {
      %cst_10 = arith.constant 0.000000e+00 : f32
      %12 = vector.broadcast %cst_10 : f32 to vector<8x96xf32>
      %c0_11 = arith.constant 0 : index
      %c0_12 = arith.constant 0 : index
      %13 = vector.load %arg7[%c0_11, %c0_12] : memref<8x96xf32, #tpu.memory_space<vmem>>, vector<8x96xf32>
      tpu.vector_store %arg7[%c0_11, %c0_12], %12 {strides = array<i32>} : memref<8x96xf32, #tpu.memory_space<vmem>>, vector<8x96xf32>,
    } else {
    }
    %c0 = arith.constant 0 : index
    %c0_1 = arith.constant 0 : index
    %3 = vector.load %arg7[%c0, %c0_1] : memref<8x96xf32, #tpu.memory_space<vmem>>, vector<8x96xf32>
    %c0_2 = arith.constant 0 : index
    %c0_3 = arith.constant 0 : index
    %4 = vector.load %arg3[%c0_2, %c0_3] : memref<8x32xf32, #tpu.memory_space<vmem>>, vector<8x32xf32>
    %c0_4 = arith.constant 0 : index
    %c0_5 = arith.constant 0 : index
    %5 = vector.load %arg4[%c0_4, %c0_5] : memref<32x96xf32, #tpu.memory_space<vmem>>, vector<32x96xf32>
    %cst = arith.constant dense<0.000000e+00> : vector<8x96xf32>
    %6 = tpu.matmul %4, %5, %cst {dimension_numbers = #tpu.dot_dimension_numbers<[1], [0], [0], [1], [0, 0, 1, 1], [], []>} : vector<8x32xf32>, vector<32x96xf32>, vector<8x96xf32> -> vector<8x96xf32>
    %7 = arith.addf %3, %6 : vector<8x96xf32>
    %c0_6 = arith.constant 0 : index
    %c0_7 = arith.constant 0 : index
    %8 = vector.load %arg7[%c0_6, %c0_7] : memref<8x96xf32, #tpu.memory_space<vmem>>, vector<8x96xf32>
    tpu.vector_store %arg7[%c0_6, %c0_7], %7 {strides = array<i32>} : memref<8x96xf32, #tpu.memory_space<vmem>>, vector<8x96xf32>,
    %c0_i32_8 = arith.constant 0 : i32
    %9 = arith.cmpi eq, %arg2, %c0_i32_8 : i32
    %10 = arith.extui %9 : i1 to i32
    %c0_i32_9 = arith.constant 0 : i32
    %11 = arith.cmpi ne, %10, %c0_i32_9 : i32
    scf.if %11 {
      %c0_10 = arith.constant 0 : index
      %c0_11 = arith.constant 0 : index
      %12 = vector.load %arg7[%c0_10, %c0_11] : memref<8x96xf32, #tpu.memory_space<vmem>>, vector<8x96xf32>
      %c0_12 = arith.constant 0 : index
      %c0_13 = arith.constant 0 : index
      %13 = vector.load %arg5[%c0_12, %c0_13] : memref<1x96xf32, #tpu.memory_space<vmem>>, vector<1x96xf32>
      %14 = vector.broadcast %13 : vector<1x96xf32> to vector<8x96xf32>
      %15 = arith.addf %12, %14 : vector<8x96xf32>
      %c0_14 = arith.constant 0 : index
      %c0_15 = arith.constant 0 : index
      %16 = vector.load %arg6[%c0_14, %c0_15] : memref<8x96xf32, #tpu.memory_space<vmem>>, vector<8x96xf32>
      tpu.vector_store %arg6[%c0_14, %c0_15], %15 {strides = array<i32>} : memref<8x96xf32, #tpu.memory_space<vmem>>, vector<8x96xf32>,
    } else {
    }
    return
  }
  func.func @transform_0(%arg0: i32, %arg1: i32, %arg2: i32) -> (i32, i32) {
    %c0_i32 = arith.constant 0 : i32
    return %arg0, %arg2 : i32, i32
  }
  func.func @transform_1(%arg0: i32, %arg1: i32, %arg2: i32) -> (i32, i32) {
    %c0_i32 = arith.constant 0 : i32
    return %arg2, %arg1 : i32, i32
  }
  func.func @transform_2(%arg0: i32, %arg1: i32, %arg2: i32) -> (i32, i32) {
    %c0_i32 = arith.constant 0 : i32
    %c0_i32_0 = arith.constant 0 : i32
    return %c0_i32, %arg1 : i32, i32
  }
  func.func @transform_3(%arg0: i32, %arg1: i32, %arg2: i32) -> (i32, i32) {
    %c0_i32 = arith.constant 0 : i32
    return %arg0, %arg1 : i32, i32
  }
}

module attributes {stable_mosaic.version = 11 : i64} {
  func.func @_linear_add_ln_kernel(%arg0: i32, %arg1: i32, %arg2: memref<8x32xf32, #tpu.memory_space<vmem>>, %arg3: memref<32x32xf32, #tpu.memory_space<vmem>>, %arg4: memref<1x32xf32, #tpu.memory_space<vmem>>, %arg5: memref<8x32xf32, #tpu.memory_space<vmem>>, %arg6: memref<1x32xf32, #tpu.memory_space<vmem>>, %arg7: memref<1x32xf32, #tpu.memory_space<vmem>>, %arg8: memref<8x32xf32, #tpu.memory_space<vmem>>, %arg9: memref<8x32xf32, #tpu.memory_space<vmem>>) attributes {dimension_semantics = [#tpu.dimension_semantics<parallel>, #tpu.dimension_semantics<arbitrary>], iteration_bounds = array<i64: 2, 1>, scalar_prefetch = 0 : i64, scratch_operands = 1 : i64, tpu.core_type = #tpu.core_type<tc>, window_params = [{transform_indices = @transform_0, window_bounds = array<i64: 8, 32>}, {transform_indices = @transform_1, window_bounds = array<i64: 32, 32>}, {pipeline_mode = #tpu.pipeline_mode<synchronous>, transform_indices = @transform_2, window_bounds = array<i64: 1, 32>}, {transform_indices = @transform_3, window_bounds = array<i64: 8, 32>}, {pipeline_mode = #tpu.pipeline_mode<synchronous>, transform_indices = @transform_4, window_bounds = array<i64: 1, 32>}, {pipeline_mode = #tpu.pipeline_mode<synchronous>, transform_indices = @transform_5, window_bounds = array<i64: 1, 32>}, {transform_indices = @transform_6, window_bounds = array<i64: 8, 32>}]} {
    %c0_i32 = arith.constant 0 : i32
    %0 = arith.cmpi eq, %arg1, %c0_i32 : i32
    %1 = arith.extui %0 : i1 to i32
    %c0_i32_0 = arith.constant 0 : i32
    %2 = arith.cmpi ne, %1, %c0_i32_0 : i32
    scf.if %2 {
      %cst_10 = arith.constant 0.000000e+00 : f32
      %12 = vector.broadcast %cst_10 : f32 to vector<8x32xf32>
      %c0_11 = arith.constant 0 : index
      %c0_12 = arith.constant 0 : index
      %13 = vector.load %arg9[%c0_11, %c0_12] : memref<8x32xf32, #tpu.memory_space<vmem>>, vector<8x32xf32>
      tpu.vector_store %arg9[%c0_11, %c0_12], %12 {strides = array<i32>} : memref<8x32xf32, #tpu.memory_space<vmem>>, vector<8x32xf32>,
    } else {
    }
    %c0 = arith.constant 0 : index
    %c0_1 = arith.constant 0 : index
    %3 = vector.load %arg9[%c0, %c0_1] : memref<8x32xf32, #tpu.memory_space<vmem>>, vector<8x32xf32>
    %c0_2 = arith.constant 0 : index
    %c0_3 = arith.constant 0 : index
    %4 = vector.load %arg2[%c0_2, %c0_3] : memref<8x32xf32, #tpu.memory_space<vmem>>, vector<8x32xf32>
    %c0_4 = arith.constant 0 : index
    %c0_5 = arith.constant 0 : index
    %5 = vector.load %arg3[%c0_4, %c0_5] : memref<32x32xf32, #tpu.memory_space<vmem>>, vector<32x32xf32>
    %cst = arith.constant dense<0.000000e+00> : vector<8x32xf32>
    %6 = tpu.matmul %4, %5, %cst {dimension_numbers = #tpu.dot_dimension_numbers<[1], [0], [0], [1], [0, 0, 1, 1], [], []>} : vector<8x32xf32>, vector<32x32xf32>, vector<8x32xf32> -> vector<8x32xf32>
    %7 = arith.addf %3, %6 : vector<8x32xf32>
    %c0_6 = arith.constant 0 : index
    %c0_7 = arith.constant 0 : index
    %8 = vector.load %arg9[%c0_6, %c0_7] : memref<8x32xf32, #tpu.memory_space<vmem>>, vector<8x32xf32>
    tpu.vector_store %arg9[%c0_6, %c0_7], %7 {strides = array<i32>} : memref<8x32xf32, #tpu.memory_space<vmem>>, vector<8x32xf32>,
    %c0_i32_8 = arith.constant 0 : i32
    %9 = arith.cmpi eq, %arg1, %c0_i32_8 : i32
    %10 = arith.extui %9 : i1 to i32
    %c0_i32_9 = arith.constant 0 : i32
    %11 = arith.cmpi ne, %10, %c0_i32_9 : i32
    scf.if %11 {
      %c0_10 = arith.constant 0 : index
      %c0_11 = arith.constant 0 : index
      %12 = vector.load %arg9[%c0_10, %c0_11] : memref<8x32xf32, #tpu.memory_space<vmem>>, vector<8x32xf32>
      %c0_12 = arith.constant 0 : index
      %c0_13 = arith.constant 0 : index
      %13 = vector.load %arg4[%c0_12, %c0_13] : memref<1x32xf32, #tpu.memory_space<vmem>>, vector<1x32xf32>
      %14 = vector.broadcast %13 : vector<1x32xf32> to vector<8x32xf32>
      %15 = arith.addf %12, %14 : vector<8x32xf32>
      %c0_14 = arith.constant 0 : index
      %c0_15 = arith.constant 0 : index
      %16 = vector.load %arg5[%c0_14, %c0_15] : memref<8x32xf32, #tpu.memory_space<vmem>>, vector<8x32xf32>
      %17 = arith.addf %15, %16 : vector<8x32xf32>
      %cst_16 = arith.constant dense<0.000000e+00> : vector<8xf32>
      %18 = vector.multi_reduction <add>, %17, %cst_16 [1] : vector<8x32xf32> to vector<8xf32>
      %19 = vector.shape_cast %18 : vector<8xf32> to vector<8x1xf32>
      %cst_17 = arith.constant 3.200000e+01 : f32
      %20 = vector.broadcast %cst_17 : f32 to vector<8x1xf32>
      %21 = arith.divf %19, %20 : vector<8x1xf32>
      %22 = vector.broadcast %21 : vector<8x1xf32> to vector<8x32xf32>
      %23 = arith.subf %17, %22 : vector<8x32xf32>
      %24 = arith.mulf %23, %23 : vector<8x32xf32>
      %cst_18 = arith.constant dense<0.000000e+00> : vector<8xf32>
      %25 = vector.multi_reduction <add>, %24, %cst_18 [1] : vector<8x32xf32> to vector<8xf32>
      %26 = vector.shape_cast %25 : vector<8xf32> to vector<8x1xf32>
      %cst_19 = arith.constant 3.200000e+01 : f32
      %27 = vector.broadcast %cst_19 : f32 to vector<8x1xf32>
      %28 = arith.divf %26, %27 : vector<8x1xf32>
      %cst_20 = arith.constant 9.99999974E-6 : f32
      %29 = vector.broadcast %cst_20 : f32 to vector<8x1xf32>
      %30 = arith.addf %28, %29 : vector<8x1xf32>
      %31 = math.rsqrt %30 : vector<8x1xf32>
      %32 = vector.broadcast %31 : vector<8x1xf32> to vector<8x32xf32>
      %33 = arith.mulf %23, %32 : vector<8x32xf32>
      %c0_21 = arith.constant 0 : index
      %c0_22 = arith.constant 0 : index
      %34 = vector.load %arg6[%c0_21, %c0_22] : memref<1x32xf32, #tpu.memory_space<vmem>>, vector<1x32xf32>
      %35 = vector.broadcast %34 : vector<1x32xf32> to vector<8x32xf32>
      %36 = arith.mulf %33, %35 : vector<8x32xf32>
      %c0_23 = arith.constant 0 : index
      %c0_24 = arith.constant 0 : index
      %37 = vector.load %arg7[%c0_23, %c0_24] : memref<1x32xf32, #tpu.memory_space<vmem>>, vector<1x32xf32>
      %38 = vector.broadcast %37 : vector<1x32xf32> to vector<8x32xf32>
      %39 = arith.addf %36, %38 : vector<8x32xf32>
      %c0_25 = arith.constant 0 : index
      %c0_26 = arith.constant 0 : index
      %40 = vector.load %arg8[%c0_25, %c0_26] : memref<8x32xf32, #tpu.memory_space<vmem>>, vector<8x32xf32>
      tpu.vector_store %arg8[%c0_25, %c0_26], %39 {strides = array<i32>} : memref<8x32xf32, #tpu.memory_space<vmem>>, vector<8x32xf32>,
    } else {
    }
    return
  }
  func.func @transform_0(%arg0: i32, %arg1: i32) -> (i32, i32) {
    %c0_i32 = arith.constant 0 : i32
    return %arg0, %arg1 : i32, i32
  }
  func.func @transform_1(%arg0: i32, %arg1: i32) -> (i32, i32) {
    %c0_i32 = arith.constant 0 : i32
    %c0_i32_0 = arith.constant 0 : i32
    return %arg1, %c0_i32 : i32, i32
  }
  func.func @transform_2(%arg0: i32, %arg1: i32) -> (i32, i32) {
    %c0_i32 = arith.constant 0 : i32
    %c0_i32_0 = arith.constant 0 : i32
    %c0_i32_1 = arith.constant 0 : i32
    return %c0_i32, %c0_i32_0 : i32, i32
  }
  func.func @transform_3(%arg0: i32, %arg1: i32) -> (i32, i32) {
    %c0_i32 = arith.constant 0 : i32
    %c0_i32_0 = arith.constant 0 : i32
    return %arg0, %c0_i32 : i32, i32
  }
  func.func @transform_4(%arg0: i32, %arg1: i32) -> (i32, i32) {
    %c0_i32 = arith.constant 0 : i32
    %c0_i32_0 = arith.constant 0 : i32
    %c0_i32_1 = arith.constant 0 : i32
    return %c0_i32, %c0_i32_0 : i32, i32
  }
  func.func @transform_5(%arg0: i32, %arg1: i32) -> (i32, i32) {
    %c0_i32 = arith.constant 0 : i32
    %c0_i32_0 = arith.constant 0 : i32
    %c0_i32_1 = arith.constant 0 : i32
    return %c0_i32, %c0_i32_0 : i32, i32
  }
  func.func @transform_6(%arg0: i32, %arg1: i32) -> (i32, i32) {
    %c0_i32 = arith.constant 0 : i32
    %c0_i32_0 = arith.constant 0 : i32
    return %arg0, %c0_i32 : i32, i32
  }
}

module attributes {stable_mosaic.version = 11 : i64} {
  func.func @_attention_kernel(%arg0: i32, %arg1: i32, %arg2: memref<1x8x96xf32, #tpu.memory_space<vmem>>, %arg3: memref<1x8x96xf32, #tpu.memory_space<vmem>>, %arg4: memref<1x8x8xf32, #tpu.memory_space<vmem>>, %arg5: memref<1x8x32xf32, #tpu.memory_space<vmem>>) attributes {dimension_semantics = [#tpu.dimension_semantics<parallel>, #tpu.dimension_semantics<parallel>], iteration_bounds = array<i64: 2, 1>, scalar_prefetch = 0 : i64, scratch_operands = 0 : i64, tpu.core_type = #tpu.core_type<tc>, window_params = [{transform_indices = @transform_0, window_bounds = array<i64: 1, 8, 96>}, {transform_indices = @transform_1, window_bounds = array<i64: 1, 8, 96>}, {transform_indices = @transform_2, window_bounds = array<i64: 1, 8, 8>}, {transform_indices = @transform_3, window_bounds = array<i64: 1, 8, 32>}]} {
    %c0 = arith.constant 0 : index
    %c0_0 = arith.constant 0 : index
    %c0_1 = arith.constant 0 : index
    %0 = vector.load %arg2[%c0, %c0_0, %c0_1] : memref<1x8x96xf32, #tpu.memory_space<vmem>>, vector<1x8x96xf32>
    %1 = vector.shape_cast %0 : vector<1x8x96xf32> to vector<8x96xf32>
    %c0_2 = arith.constant 0 : index
    %c0_3 = arith.constant 0 : index
    %c0_4 = arith.constant 0 : index
    %2 = vector.load %arg3[%c0_2, %c0_3, %c0_4] : memref<1x8x96xf32, #tpu.memory_space<vmem>>, vector<1x8x96xf32>
    %3 = vector.shape_cast %2 : vector<1x8x96xf32> to vector<8x96xf32>
    %c0_5 = arith.constant 0 : index
    %c0_6 = arith.constant 0 : index
    %c0_7 = arith.constant 0 : index
    %4 = vector.load %arg4[%c0_5, %c0_6, %c0_7] : memref<1x8x8xf32, #tpu.memory_space<vmem>>, vector<1x8x8xf32>
    %5 = vector.shape_cast %4 : vector<1x8x8xf32> to vector<8x8xf32>
    %6 = vector.extract_strided_slice %1 {offsets = [0, 0], sizes = [8, 8], strides = [1, 1]} : vector<8x96xf32> to vector<8x8xf32>
    %7 = vector.extract_strided_slice %3 {offsets = [0, 32], sizes = [8, 8], strides = [1, 1]} : vector<8x96xf32> to vector<8x8xf32>
    %8 = vector.extract_strided_slice %3 {offsets = [0, 64], sizes = [8, 8], strides = [1, 1]} : vector<8x96xf32> to vector<8x8xf32>
    %cst = arith.constant dense<0.000000e+00> : vector<8x8xf32>
    %9 = tpu.matmul %6, %7, %cst {dimension_numbers = #tpu.dot_dimension_numbers<[1], [1], [0], [0], [0, 0, 1, 0], [], []>} : vector<8x8xf32>, vector<8x8xf32>, vector<8x8xf32> -> vector<8x8xf32>
    %cst_8 = arith.constant 0.353553385 : f32
    %10 = vector.broadcast %cst_8 : f32 to vector<8x8xf32>
    %11 = arith.mulf %9, %10 : vector<8x8xf32>
    %12 = arith.addf %11, %5 : vector<8x8xf32>
    %cst_9 = arith.constant dense<0xFF800000> : vector<8xf32>
    %13 = vector.multi_reduction <maximumf>, %12, %cst_9 [1] : vector<8x8xf32> to vector<8xf32>
    %14 = vector.shape_cast %13 : vector<8xf32> to vector<8x1xf32>
    %15 = vector.broadcast %14 : vector<8x1xf32> to vector<8x8xf32>
    %16 = arith.subf %12, %15 : vector<8x8xf32>
    %17 = math.exp %16 : vector<8x8xf32>
    %cst_10 = arith.constant dense<0.000000e+00> : vector<8xf32>
    %18 = vector.multi_reduction <add>, %17, %cst_10 [1] : vector<8x8xf32> to vector<8xf32>
    %19 = vector.shape_cast %18 : vector<8xf32> to vector<8x1xf32>
    %20 = tpu.reciprocal %19 {approx = true} : vector<8x1xf32> -> vector<8x1xf32>
    %21 = vector.broadcast %20 : vector<8x1xf32> to vector<8x8xf32>
    %22 = arith.mulf %17, %21 : vector<8x8xf32>
    %cst_11 = arith.constant dense<0.000000e+00> : vector<8x8xf32>
    %23 = tpu.matmul %22, %8, %cst_11 {dimension_numbers = #tpu.dot_dimension_numbers<[1], [0], [0], [1], [0, 0, 1, 1], [], []>} : vector<8x8xf32>, vector<8x8xf32>, vector<8x8xf32> -> vector<8x8xf32>
    %24 = vector.extract_strided_slice %1 {offsets = [0, 8], sizes = [8, 8], strides = [1, 1]} : vector<8x96xf32> to vector<8x8xf32>
    %25 = vector.extract_strided_slice %3 {offsets = [0, 40], sizes = [8, 8], strides = [1, 1]} : vector<8x96xf32> to vector<8x8xf32>
    %26 = vector.extract_strided_slice %3 {offsets = [0, 72], sizes = [8, 8], strides = [1, 1]} : vector<8x96xf32> to vector<8x8xf32>
    %cst_12 = arith.constant dense<0.000000e+00> : vector<8x8xf32>
    %27 = tpu.matmul %24, %25, %cst_12 {dimension_numbers = #tpu.dot_dimension_numbers<[1], [1], [0], [0], [0, 0, 1, 0], [], []>} : vector<8x8xf32>, vector<8x8xf32>, vector<8x8xf32> -> vector<8x8xf32>
    %cst_13 = arith.constant 0.353553385 : f32
    %28 = vector.broadcast %cst_13 : f32 to vector<8x8xf32>
    %29 = arith.mulf %27, %28 : vector<8x8xf32>
    %30 = arith.addf %29, %5 : vector<8x8xf32>
    %cst_14 = arith.constant dense<0xFF800000> : vector<8xf32>
    %31 = vector.multi_reduction <maximumf>, %30, %cst_14 [1] : vector<8x8xf32> to vector<8xf32>
    %32 = vector.shape_cast %31 : vector<8xf32> to vector<8x1xf32>
    %33 = vector.broadcast %32 : vector<8x1xf32> to vector<8x8xf32>
    %34 = arith.subf %30, %33 : vector<8x8xf32>
    %35 = math.exp %34 : vector<8x8xf32>
    %cst_15 = arith.constant dense<0.000000e+00> : vector<8xf32>
    %36 = vector.multi_reduction <add>, %35, %cst_15 [1] : vector<8x8xf32> to vector<8xf32>
    %37 = vector.shape_cast %36 : vector<8xf32> to vector<8x1xf32>
    %38 = tpu.reciprocal %37 {approx = true} : vector<8x1xf32> -> vector<8x1xf32>
    %39 = vector.broadcast %38 : vector<8x1xf32> to vector<8x8xf32>
    %40 = arith.mulf %35, %39 : vector<8x8xf32>
    %cst_16 = arith.constant dense<0.000000e+00> : vector<8x8xf32>
    %41 = tpu.matmul %40, %26, %cst_16 {dimension_numbers = #tpu.dot_dimension_numbers<[1], [0], [0], [1], [0, 0, 1, 1], [], []>} : vector<8x8xf32>, vector<8x8xf32>, vector<8x8xf32> -> vector<8x8xf32>
    %42 = vector.extract_strided_slice %1 {offsets = [0, 16], sizes = [8, 8], strides = [1, 1]} : vector<8x96xf32> to vector<8x8xf32>
    %43 = vector.extract_strided_slice %3 {offsets = [0, 48], sizes = [8, 8], strides = [1, 1]} : vector<8x96xf32> to vector<8x8xf32>
    %44 = vector.extract_strided_slice %3 {offsets = [0, 80], sizes = [8, 8], strides = [1, 1]} : vector<8x96xf32> to vector<8x8xf32>
    %cst_17 = arith.constant dense<0.000000e+00> : vector<8x8xf32>
    %45 = tpu.matmul %42, %43, %cst_17 {dimension_numbers = #tpu.dot_dimension_numbers<[1], [1], [0], [0], [0, 0, 1, 0], [], []>} : vector<8x8xf32>, vector<8x8xf32>, vector<8x8xf32> -> vector<8x8xf32>
    %cst_18 = arith.constant 0.353553385 : f32
    %46 = vector.broadcast %cst_18 : f32 to vector<8x8xf32>
    %47 = arith.mulf %45, %46 : vector<8x8xf32>
    %48 = arith.addf %47, %5 : vector<8x8xf32>
    %cst_19 = arith.constant dense<0xFF800000> : vector<8xf32>
    %49 = vector.multi_reduction <maximumf>, %48, %cst_19 [1] : vector<8x8xf32> to vector<8xf32>
    %50 = vector.shape_cast %49 : vector<8xf32> to vector<8x1xf32>
    %51 = vector.broadcast %50 : vector<8x1xf32> to vector<8x8xf32>
    %52 = arith.subf %48, %51 : vector<8x8xf32>
    %53 = math.exp %52 : vector<8x8xf32>
    %cst_20 = arith.constant dense<0.000000e+00> : vector<8xf32>
    %54 = vector.multi_reduction <add>, %53, %cst_20 [1] : vector<8x8xf32> to vector<8xf32>
    %55 = vector.shape_cast %54 : vector<8xf32> to vector<8x1xf32>
    %56 = tpu.reciprocal %55 {approx = true} : vector<8x1xf32> -> vector<8x1xf32>
    %57 = vector.broadcast %56 : vector<8x1xf32> to vector<8x8xf32>
    %58 = arith.mulf %53, %57 : vector<8x8xf32>
    %cst_21 = arith.constant dense<0.000000e+00> : vector<8x8xf32>
    %59 = tpu.matmul %58, %44, %cst_21 {dimension_numbers = #tpu.dot_dimension_numbers<[1], [0], [0], [1], [0, 0, 1, 1], [], []>} : vector<8x8xf32>, vector<8x8xf32>, vector<8x8xf32> -> vector<8x8xf32>
    %60 = vector.extract_strided_slice %1 {offsets = [0, 24], sizes = [8, 8], strides = [1, 1]} : vector<8x96xf32> to vector<8x8xf32>
    %61 = vector.extract_strided_slice %3 {offsets = [0, 56], sizes = [8, 8], strides = [1, 1]} : vector<8x96xf32> to vector<8x8xf32>
    %62 = vector.extract_strided_slice %3 {offsets = [0, 88], sizes = [8, 8], strides = [1, 1]} : vector<8x96xf32> to vector<8x8xf32>
    %cst_22 = arith.constant dense<0.000000e+00> : vector<8x8xf32>
    %63 = tpu.matmul %60, %61, %cst_22 {dimension_numbers = #tpu.dot_dimension_numbers<[1], [1], [0], [0], [0, 0, 1, 0], [], []>} : vector<8x8xf32>, vector<8x8xf32>, vector<8x8xf32> -> vector<8x8xf32>
    %cst_23 = arith.constant 0.353553385 : f32
    %64 = vector.broadcast %cst_23 : f32 to vector<8x8xf32>
    %65 = arith.mulf %63, %64 : vector<8x8xf32>
    %66 = arith.addf %65, %5 : vector<8x8xf32>
    %cst_24 = arith.constant dense<0xFF800000> : vector<8xf32>
    %67 = vector.multi_reduction <maximumf>, %66, %cst_24 [1] : vector<8x8xf32> to vector<8xf32>
    %68 = vector.shape_cast %67 : vector<8xf32> to vector<8x1xf32>
    %69 = vector.broadcast %68 : vector<8x1xf32> to vector<8x8xf32>
    %70 = arith.subf %66, %69 : vector<8x8xf32>
    %71 = math.exp %70 : vector<8x8xf32>
    %cst_25 = arith.constant dense<0.000000e+00> : vector<8xf32>
    %72 = vector.multi_reduction <add>, %71, %cst_25 [1] : vector<8x8xf32> to vector<8xf32>
    %73 = vector.shape_cast %72 : vector<8xf32> to vector<8x1xf32>
    %74 = tpu.reciprocal %73 {approx = true} : vector<8x1xf32> -> vector<8x1xf32>
    %75 = vector.broadcast %74 : vector<8x1xf32> to vector<8x8xf32>
    %76 = arith.mulf %71, %75 : vector<8x8xf32>
    %cst_26 = arith.constant dense<0.000000e+00> : vector<8x8xf32>
    %77 = tpu.matmul %76, %62, %cst_26 {dimension_numbers = #tpu.dot_dimension_numbers<[1], [0], [0], [1], [0, 0, 1, 1], [], []>} : vector<8x8xf32>, vector<8x8xf32>, vector<8x8xf32> -> vector<8x8xf32>
    %78 = tpu.concatenate %23, %41, %59, %77 in 1 : vector<8x8xf32>, vector<8x8xf32>, vector<8x8xf32>, vector<8x8xf32> -> vector<8x32xf32>
    %c0_27 = arith.constant 0 : index
    %c0_28 = arith.constant 0 : index
    %c0_29 = arith.constant 0 : index
    %79 = vector.load %arg5[%c0_27, %c0_28, %c0_29] : memref<1x8x32xf32, #tpu.memory_space<vmem>>, vector<1x8x32xf32>
    %80 = vector.shape_cast %79 : vector<1x8x32xf32> to vector<8x32xf32>
    %81 = vector.shape_cast %78 : vector<8x32xf32> to vector<1x8x32xf32>
    tpu.vector_store %arg5[%c0_27, %c0_28, %c0_29], %81 {strides = array<i32>} : memref<1x8x32xf32, #tpu.memory_space<vmem>>, vector<1x8x32xf32>,
    return
  }
  func.func @transform_0(%arg0: i32, %arg1: i32) -> (i32, i32, i32) {
    %c0_i32 = arith.constant 0 : i32
    %c0_i32_0 = arith.constant 0 : i32
    return %arg0, %arg1, %c0_i32 : i32, i32, i32
  }
  func.func @transform_1(%arg0: i32, %arg1: i32) -> (i32, i32, i32) {
    %c0_i32 = arith.constant 0 : i32
    %c0_i32_0 = arith.constant 0 : i32
    %c0_i32_1 = arith.constant 0 : i32
    return %arg0, %c0_i32, %c0_i32_0 : i32, i32, i32
  }
  func.func @transform_2(%arg0: i32, %arg1: i32) -> (i32, i32, i32) {
    %c0_i32 = arith.constant 0 : i32
    %c0_i32_0 = arith.constant 0 : i32
    return %arg0, %arg1, %c0_i32 : i32, i32, i32
  }
  func.func @transform_3(%arg0: i32, %arg1: i32) -> (i32, i32, i32) {
    %c0_i32 = arith.constant 0 : i32
    %c0_i32_0 = arith.constant 0 : i32
    return %arg0, %arg1, %c0_i32 : i32, i32, i32
  }
}

module attributes {stable_mosaic.version = 11 : i64} {
  func.func @_linear_kernel(%arg0: i32, %arg1: i32, %arg2: i32, %arg3: memref<8x32xf32, #tpu.memory_space<vmem>>, %arg4: memref<32x32xf32, #tpu.memory_space<vmem>>, %arg5: memref<1x32xf32, #tpu.memory_space<vmem>>, %arg6: memref<8x32xf32, #tpu.memory_space<vmem>>, %arg7: memref<8x32xf32, #tpu.memory_space<vmem>>) attributes {dimension_semantics = [#tpu.dimension_semantics<parallel>, #tpu.dimension_semantics<parallel>, #tpu.dimension_semantics<arbitrary>], iteration_bounds = array<i64: 2, 1, 1>, scalar_prefetch = 0 : i64, scratch_operands = 1 : i64, tpu.core_type = #tpu.core_type<tc>, window_params = [{transform_indices = @transform_0, window_bounds = array<i64: 8, 32>}, {transform_indices = @transform_1, window_bounds = array<i64: 32, 32>}, {transform_indices = @transform_2, window_bounds = array<i64: 1, 32>}, {transform_indices = @transform_3, window_bounds = array<i64: 8, 32>}]} {
    %c0_i32 = arith.constant 0 : i32
    %0 = arith.cmpi eq, %arg2, %c0_i32 : i32
    %1 = arith.extui %0 : i1 to i32
    %c0_i32_0 = arith.constant 0 : i32
    %2 = arith.cmpi ne, %1, %c0_i32_0 : i32
    scf.if %2 {
      %cst_10 = arith.constant 0.000000e+00 : f32
      %12 = vector.broadcast %cst_10 : f32 to vector<8x32xf32>
      %c0_11 = arith.constant 0 : index
      %c0_12 = arith.constant 0 : index
      %13 = vector.load %arg7[%c0_11, %c0_12] : memref<8x32xf32, #tpu.memory_space<vmem>>, vector<8x32xf32>
      tpu.vector_store %arg7[%c0_11, %c0_12], %12 {strides = array<i32>} : memref<8x32xf32, #tpu.memory_space<vmem>>, vector<8x32xf32>,
    } else {
    }
    %c0 = arith.constant 0 : index
    %c0_1 = arith.constant 0 : index
    %3 = vector.load %arg7[%c0, %c0_1] : memref<8x32xf32, #tpu.memory_space<vmem>>, vector<8x32xf32>
    %c0_2 = arith.constant 0 : index
    %c0_3 = arith.constant 0 : index
    %4 = vector.load %arg3[%c0_2, %c0_3] : memref<8x32xf32, #tpu.memory_space<vmem>>, vector<8x32xf32>
    %c0_4 = arith.constant 0 : index
    %c0_5 = arith.constant 0 : index
    %5 = vector.load %arg4[%c0_4, %c0_5] : memref<32x32xf32, #tpu.memory_space<vmem>>, vector<32x32xf32>
    %cst = arith.constant dense<0.000000e+00> : vector<8x32xf32>
    %6 = tpu.matmul %4, %5, %cst {dimension_numbers = #tpu.dot_dimension_numbers<[1], [0], [0], [1], [0, 0, 1, 1], [], []>} : vector<8x32xf32>, vector<32x32xf32>, vector<8x32xf32> -> vector<8x32xf32>
    %7 = arith.addf %3, %6 : vector<8x32xf32>
    %c0_6 = arith.constant 0 : index
    %c0_7 = arith.constant 0 : index
    %8 = vector.load %arg7[%c0_6, %c0_7] : memref<8x32xf32, #tpu.memory_space<vmem>>, vector<8x32xf32>
    tpu.vector_store %arg7[%c0_6, %c0_7], %7 {strides = array<i32>} : memref<8x32xf32, #tpu.memory_space<vmem>>, vector<8x32xf32>,
    %c0_i32_8 = arith.constant 0 : i32
    %9 = arith.cmpi eq, %arg2, %c0_i32_8 : i32
    %10 = arith.extui %9 : i1 to i32
    %c0_i32_9 = arith.constant 0 : i32
    %11 = arith.cmpi ne, %10, %c0_i32_9 : i32
    scf.if %11 {
      %c0_10 = arith.constant 0 : index
      %c0_11 = arith.constant 0 : index
      %12 = vector.load %arg7[%c0_10, %c0_11] : memref<8x32xf32, #tpu.memory_space<vmem>>, vector<8x32xf32>
      %c0_12 = arith.constant 0 : index
      %c0_13 = arith.constant 0 : index
      %13 = vector.load %arg5[%c0_12, %c0_13] : memref<1x32xf32, #tpu.memory_space<vmem>>, vector<1x32xf32>
      %14 = vector.broadcast %13 : vector<1x32xf32> to vector<8x32xf32>
      %15 = arith.addf %12, %14 : vector<8x32xf32>
      %c0_14 = arith.constant 0 : index
      %c0_15 = arith.constant 0 : index
      %16 = vector.load %arg6[%c0_14, %c0_15] : memref<8x32xf32, #tpu.memory_space<vmem>>, vector<8x32xf32>
      tpu.vector_store %arg6[%c0_14, %c0_15], %15 {strides = array<i32>} : memref<8x32xf32, #tpu.memory_space<vmem>>, vector<8x32xf32>,
    } else {
    }
    return
  }
  func.func @transform_0(%arg0: i32, %arg1: i32, %arg2: i32) -> (i32, i32) {
    %c0_i32 = arith.constant 0 : i32
    return %arg0, %arg2 : i32, i32
  }
  func.func @transform_1(%arg0: i32, %arg1: i32, %arg2: i32) -> (i32, i32) {
    %c0_i32 = arith.constant 0 : i32
    return %arg2, %arg1 : i32, i32
  }
  func.func @transform_2(%arg0: i32, %arg1: i32, %arg2: i32) -> (i32, i32) {
    %c0_i32 = arith.constant 0 : i32
    %c0_i32_0 = arith.constant 0 : i32
    return %c0_i32, %arg1 : i32, i32
  }
  func.func @transform_3(%arg0: i32, %arg1: i32, %arg2: i32) -> (i32, i32) {
    %c0_i32 = arith.constant 0 : i32
    return %arg0, %arg1 : i32, i32
  }
}

module attributes {stable_mosaic.version = 11 : i64} {
  func.func @_linear_kernel(%arg0: i32, %arg1: i32, %arg2: i32, %arg3: memref<16x32xf32, #tpu.memory_space<vmem>>, %arg4: memref<32x64xf32, #tpu.memory_space<vmem>>, %arg5: memref<1x64xf32, #tpu.memory_space<vmem>>, %arg6: memref<16x64xf32, #tpu.memory_space<vmem>>, %arg7: memref<16x64xf32, #tpu.memory_space<vmem>>) attributes {dimension_semantics = [#tpu.dimension_semantics<parallel>, #tpu.dimension_semantics<parallel>, #tpu.dimension_semantics<arbitrary>], iteration_bounds = array<i64: 2, 1, 1>, scalar_prefetch = 0 : i64, scratch_operands = 1 : i64, tpu.core_type = #tpu.core_type<tc>, window_params = [{transform_indices = @transform_0, window_bounds = array<i64: 16, 32>}, {transform_indices = @transform_1, window_bounds = array<i64: 32, 64>}, {transform_indices = @transform_2, window_bounds = array<i64: 1, 64>}, {transform_indices = @transform_3, window_bounds = array<i64: 16, 64>}]} {
    %c0_i32 = arith.constant 0 : i32
    %0 = arith.cmpi eq, %arg2, %c0_i32 : i32
    %1 = arith.extui %0 : i1 to i32
    %c0_i32_0 = arith.constant 0 : i32
    %2 = arith.cmpi ne, %1, %c0_i32_0 : i32
    scf.if %2 {
      %cst_10 = arith.constant 0.000000e+00 : f32
      %12 = vector.broadcast %cst_10 : f32 to vector<16x64xf32>
      %c0_11 = arith.constant 0 : index
      %c0_12 = arith.constant 0 : index
      %13 = vector.load %arg7[%c0_11, %c0_12] : memref<16x64xf32, #tpu.memory_space<vmem>>, vector<16x64xf32>
      tpu.vector_store %arg7[%c0_11, %c0_12], %12 {strides = array<i32>} : memref<16x64xf32, #tpu.memory_space<vmem>>, vector<16x64xf32>,
    } else {
    }
    %c0 = arith.constant 0 : index
    %c0_1 = arith.constant 0 : index
    %3 = vector.load %arg7[%c0, %c0_1] : memref<16x64xf32, #tpu.memory_space<vmem>>, vector<16x64xf32>
    %c0_2 = arith.constant 0 : index
    %c0_3 = arith.constant 0 : index
    %4 = vector.load %arg3[%c0_2, %c0_3] : memref<16x32xf32, #tpu.memory_space<vmem>>, vector<16x32xf32>
    %c0_4 = arith.constant 0 : index
    %c0_5 = arith.constant 0 : index
    %5 = vector.load %arg4[%c0_4, %c0_5] : memref<32x64xf32, #tpu.memory_space<vmem>>, vector<32x64xf32>
    %cst = arith.constant dense<0.000000e+00> : vector<16x64xf32>
    %6 = tpu.matmul %4, %5, %cst {dimension_numbers = #tpu.dot_dimension_numbers<[1], [0], [0], [1], [0, 0, 1, 1], [], []>} : vector<16x32xf32>, vector<32x64xf32>, vector<16x64xf32> -> vector<16x64xf32>
    %7 = arith.addf %3, %6 : vector<16x64xf32>
    %c0_6 = arith.constant 0 : index
    %c0_7 = arith.constant 0 : index
    %8 = vector.load %arg7[%c0_6, %c0_7] : memref<16x64xf32, #tpu.memory_space<vmem>>, vector<16x64xf32>
    tpu.vector_store %arg7[%c0_6, %c0_7], %7 {strides = array<i32>} : memref<16x64xf32, #tpu.memory_space<vmem>>, vector<16x64xf32>,
    %c0_i32_8 = arith.constant 0 : i32
    %9 = arith.cmpi eq, %arg2, %c0_i32_8 : i32
    %10 = arith.extui %9 : i1 to i32
    %c0_i32_9 = arith.constant 0 : i32
    %11 = arith.cmpi ne, %10, %c0_i32_9 : i32
    scf.if %11 {
      %c0_10 = arith.constant 0 : index
      %c0_11 = arith.constant 0 : index
      %12 = vector.load %arg7[%c0_10, %c0_11] : memref<16x64xf32, #tpu.memory_space<vmem>>, vector<16x64xf32>
      %c0_12 = arith.constant 0 : index
      %c0_13 = arith.constant 0 : index
      %13 = vector.load %arg5[%c0_12, %c0_13] : memref<1x64xf32, #tpu.memory_space<vmem>>, vector<1x64xf32>
      %14 = vector.broadcast %13 : vector<1x64xf32> to vector<16x64xf32>
      %15 = arith.addf %12, %14 : vector<16x64xf32>
      %c0_14 = arith.constant 0 : index
      %c0_15 = arith.constant 0 : index
      %16 = vector.load %arg6[%c0_14, %c0_15] : memref<16x64xf32, #tpu.memory_space<vmem>>, vector<16x64xf32>
      tpu.vector_store %arg6[%c0_14, %c0_15], %15 {strides = array<i32>} : memref<16x64xf32, #tpu.memory_space<vmem>>, vector<16x64xf32>,
    } else {
    }
    return
  }
  func.func @transform_0(%arg0: i32, %arg1: i32, %arg2: i32) -> (i32, i32) {
    %c0_i32 = arith.constant 0 : i32
    return %arg0, %arg2 : i32, i32
  }
  func.func @transform_1(%arg0: i32, %arg1: i32, %arg2: i32) -> (i32, i32) {
    %c0_i32 = arith.constant 0 : i32
    return %arg2, %arg1 : i32, i32
  }
  func.func @transform_2(%arg0: i32, %arg1: i32, %arg2: i32) -> (i32, i32) {
    %c0_i32 = arith.constant 0 : i32
    %c0_i32_0 = arith.constant 0 : i32
    return %c0_i32, %arg1 : i32, i32
  }
  func.func @transform_3(%arg0: i32, %arg1: i32, %arg2: i32) -> (i32, i32) {
    %c0_i32 = arith.constant 0 : i32
    return %arg0, %arg1 : i32, i32
  }
}

module attributes {stable_mosaic.version = 11 : i64} {
  func.func @_linear_kernel(%arg0: i32, %arg1: i32, %arg2: i32, %arg3: memref<8x32xf32, #tpu.memory_space<vmem>>, %arg4: memref<32x64xf32, #tpu.memory_space<vmem>>, %arg5: memref<1x64xf32, #tpu.memory_space<vmem>>, %arg6: memref<8x64xf32, #tpu.memory_space<vmem>>, %arg7: memref<8x64xf32, #tpu.memory_space<vmem>>) attributes {dimension_semantics = [#tpu.dimension_semantics<parallel>, #tpu.dimension_semantics<parallel>, #tpu.dimension_semantics<arbitrary>], iteration_bounds = array<i64: 2, 1, 1>, scalar_prefetch = 0 : i64, scratch_operands = 1 : i64, tpu.core_type = #tpu.core_type<tc>, window_params = [{transform_indices = @transform_0, window_bounds = array<i64: 8, 32>}, {transform_indices = @transform_1, window_bounds = array<i64: 32, 64>}, {transform_indices = @transform_2, window_bounds = array<i64: 1, 64>}, {transform_indices = @transform_3, window_bounds = array<i64: 8, 64>}]} {
    %c0_i32 = arith.constant 0 : i32
    %0 = arith.cmpi eq, %arg2, %c0_i32 : i32
    %1 = arith.extui %0 : i1 to i32
    %c0_i32_0 = arith.constant 0 : i32
    %2 = arith.cmpi ne, %1, %c0_i32_0 : i32
    scf.if %2 {
      %cst_10 = arith.constant 0.000000e+00 : f32
      %12 = vector.broadcast %cst_10 : f32 to vector<8x64xf32>
      %c0_11 = arith.constant 0 : index
      %c0_12 = arith.constant 0 : index
      %13 = vector.load %arg7[%c0_11, %c0_12] : memref<8x64xf32, #tpu.memory_space<vmem>>, vector<8x64xf32>
      tpu.vector_store %arg7[%c0_11, %c0_12], %12 {strides = array<i32>} : memref<8x64xf32, #tpu.memory_space<vmem>>, vector<8x64xf32>,
    } else {
    }
    %c0 = arith.constant 0 : index
    %c0_1 = arith.constant 0 : index
    %3 = vector.load %arg7[%c0, %c0_1] : memref<8x64xf32, #tpu.memory_space<vmem>>, vector<8x64xf32>
    %c0_2 = arith.constant 0 : index
    %c0_3 = arith.constant 0 : index
    %4 = vector.load %arg3[%c0_2, %c0_3] : memref<8x32xf32, #tpu.memory_space<vmem>>, vector<8x32xf32>
    %c0_4 = arith.constant 0 : index
    %c0_5 = arith.constant 0 : index
    %5 = vector.load %arg4[%c0_4, %c0_5] : memref<32x64xf32, #tpu.memory_space<vmem>>, vector<32x64xf32>
    %cst = arith.constant dense<0.000000e+00> : vector<8x64xf32>
    %6 = tpu.matmul %4, %5, %cst {dimension_numbers = #tpu.dot_dimension_numbers<[1], [0], [0], [1], [0, 0, 1, 1], [], []>} : vector<8x32xf32>, vector<32x64xf32>, vector<8x64xf32> -> vector<8x64xf32>
    %7 = arith.addf %3, %6 : vector<8x64xf32>
    %c0_6 = arith.constant 0 : index
    %c0_7 = arith.constant 0 : index
    %8 = vector.load %arg7[%c0_6, %c0_7] : memref<8x64xf32, #tpu.memory_space<vmem>>, vector<8x64xf32>
    tpu.vector_store %arg7[%c0_6, %c0_7], %7 {strides = array<i32>} : memref<8x64xf32, #tpu.memory_space<vmem>>, vector<8x64xf32>,
    %c0_i32_8 = arith.constant 0 : i32
    %9 = arith.cmpi eq, %arg2, %c0_i32_8 : i32
    %10 = arith.extui %9 : i1 to i32
    %c0_i32_9 = arith.constant 0 : i32
    %11 = arith.cmpi ne, %10, %c0_i32_9 : i32
    scf.if %11 {
      %c0_10 = arith.constant 0 : index
      %c0_11 = arith.constant 0 : index
      %12 = vector.load %arg7[%c0_10, %c0_11] : memref<8x64xf32, #tpu.memory_space<vmem>>, vector<8x64xf32>
      %c0_12 = arith.constant 0 : index
      %c0_13 = arith.constant 0 : index
      %13 = vector.load %arg5[%c0_12, %c0_13] : memref<1x64xf32, #tpu.memory_space<vmem>>, vector<1x64xf32>
      %14 = vector.broadcast %13 : vector<1x64xf32> to vector<8x64xf32>
      %15 = arith.addf %12, %14 : vector<8x64xf32>
      %cst_14 = arith.constant 0.000000e+00 : f32
      %16 = vector.broadcast %cst_14 : f32 to vector<8x64xf32>
      %17 = arith.maximumf %15, %16 : vector<8x64xf32>
      %c0_15 = arith.constant 0 : index
      %c0_16 = arith.constant 0 : index
      %18 = vector.load %arg6[%c0_15, %c0_16] : memref<8x64xf32, #tpu.memory_space<vmem>>, vector<8x64xf32>
      tpu.vector_store %arg6[%c0_15, %c0_16], %17 {strides = array<i32>} : memref<8x64xf32, #tpu.memory_space<vmem>>, vector<8x64xf32>,
    } else {
    }
    return
  }
  func.func @transform_0(%arg0: i32, %arg1: i32, %arg2: i32) -> (i32, i32) {
    %c0_i32 = arith.constant 0 : i32
    return %arg0, %arg2 : i32, i32
  }
  func.func @transform_1(%arg0: i32, %arg1: i32, %arg2: i32) -> (i32, i32) {
    %c0_i32 = arith.constant 0 : i32
    return %arg2, %arg1 : i32, i32
  }
  func.func @transform_2(%arg0: i32, %arg1: i32, %arg2: i32) -> (i32, i32) {
    %c0_i32 = arith.constant 0 : i32
    %c0_i32_0 = arith.constant 0 : i32
    return %c0_i32, %arg1 : i32, i32
  }
  func.func @transform_3(%arg0: i32, %arg1: i32, %arg2: i32) -> (i32, i32) {
    %c0_i32 = arith.constant 0 : i32
    return %arg0, %arg1 : i32, i32
  }
}

module attributes {stable_mosaic.version = 11 : i64} {
  func.func @_attention_kernel(%arg0: i32, %arg1: i32, %arg2: memref<1x8x32xf32, #tpu.memory_space<vmem>>, %arg3: memref<1x16x64xf32, #tpu.memory_space<vmem>>, %arg4: memref<1x8x16xf32, #tpu.memory_space<vmem>>, %arg5: memref<1x8x32xf32, #tpu.memory_space<vmem>>) attributes {dimension_semantics = [#tpu.dimension_semantics<parallel>, #tpu.dimension_semantics<parallel>], iteration_bounds = array<i64: 2, 1>, scalar_prefetch = 0 : i64, scratch_operands = 0 : i64, tpu.core_type = #tpu.core_type<tc>, window_params = [{transform_indices = @transform_0, window_bounds = array<i64: 1, 8, 32>}, {transform_indices = @transform_1, window_bounds = array<i64: 1, 16, 64>}, {transform_indices = @transform_2, window_bounds = array<i64: 1, 8, 16>}, {transform_indices = @transform_3, window_bounds = array<i64: 1, 8, 32>}]} {
    %c0 = arith.constant 0 : index
    %c0_0 = arith.constant 0 : index
    %c0_1 = arith.constant 0 : index
    %0 = vector.load %arg2[%c0, %c0_0, %c0_1] : memref<1x8x32xf32, #tpu.memory_space<vmem>>, vector<1x8x32xf32>
    %1 = vector.shape_cast %0 : vector<1x8x32xf32> to vector<8x32xf32>
    %c0_2 = arith.constant 0 : index
    %c0_3 = arith.constant 0 : index
    %c0_4 = arith.constant 0 : index
    %2 = vector.load %arg3[%c0_2, %c0_3, %c0_4] : memref<1x16x64xf32, #tpu.memory_space<vmem>>, vector<1x16x64xf32>
    %3 = vector.shape_cast %2 : vector<1x16x64xf32> to vector<16x64xf32>
    %c0_5 = arith.constant 0 : index
    %c0_6 = arith.constant 0 : index
    %c0_7 = arith.constant 0 : index
    %4 = vector.load %arg4[%c0_5, %c0_6, %c0_7] : memref<1x8x16xf32, #tpu.memory_space<vmem>>, vector<1x8x16xf32>
    %5 = vector.shape_cast %4 : vector<1x8x16xf32> to vector<8x16xf32>
    %6 = vector.extract_strided_slice %1 {offsets = [0, 0], sizes = [8, 8], strides = [1, 1]} : vector<8x32xf32> to vector<8x8xf32>
    %7 = vector.extract_strided_slice %3 {offsets = [0, 0], sizes = [16, 8], strides = [1, 1]} : vector<16x64xf32> to vector<16x8xf32>
    %8 = vector.extract_strided_slice %3 {offsets = [0, 32], sizes = [16, 8], strides = [1, 1]} : vector<16x64xf32> to vector<16x8xf32>
    %cst = arith.constant dense<0.000000e+00> : vector<8x16xf32>
    %9 = tpu.matmul %6, %7, %cst {dimension_numbers = #tpu.dot_dimension_numbers<[1], [1], [0], [0], [0, 0, 1, 0], [], []>} : vector<8x8xf32>, vector<16x8xf32>, vector<8x16xf32> -> vector<8x16xf32>
    %cst_8 = arith.constant 0.353553385 : f32
    %10 = vector.broadcast %cst_8 : f32 to vector<8x16xf32>
    %11 = arith.mulf %9, %10 : vector<8x16xf32>
    %12 = arith.addf %11, %5 : vector<8x16xf32>
    %cst_9 = arith.constant dense<0xFF800000> : vector<8xf32>
    %13 = vector.multi_reduction <maximumf>, %12, %cst_9 [1] : vector<8x16xf32> to vector<8xf32>
    %14 = vector.shape_cast %13 : vector<8xf32> to vector<8x1xf32>
    %15 = vector.broadcast %14 : vector<8x1xf32> to vector<8x16xf32>
    %16 = arith.subf %12, %15 : vector<8x16xf32>
    %17 = math.exp %16 : vector<8x16xf32>
    %cst_10 = arith.constant dense<0.000000e+00> : vector<8xf32>
    %18 = vector.multi_reduction <add>, %17, %cst_10 [1] : vector<8x16xf32> to vector<8xf32>
    %19 = vector.shape_cast %18 : vector<8xf32> to vector<8x1xf32>
    %20 = tpu.reciprocal %19 {approx = true} : vector<8x1xf32> -> vector<8x1xf32>
    %21 = vector.broadcast %20 : vector<8x1xf32> to vector<8x16xf32>
    %22 = arith.mulf %17, %21 : vector<8x16xf32>
    %cst_11 = arith.constant dense<0.000000e+00> : vector<8x8xf32>
    %23 = tpu.matmul %22, %8, %cst_11 {dimension_numbers = #tpu.dot_dimension_numbers<[1], [0], [0], [1], [0, 0, 1, 1], [], []>} : vector<8x16xf32>, vector<16x8xf32>, vector<8x8xf32> -> vector<8x8xf32>
    %24 = vector.extract_strided_slice %1 {offsets = [0, 8], sizes = [8, 8], strides = [1, 1]} : vector<8x32xf32> to vector<8x8xf32>
    %25 = vector.extract_strided_slice %3 {offsets = [0, 8], sizes = [16, 8], strides = [1, 1]} : vector<16x64xf32> to vector<16x8xf32>
    %26 = vector.extract_strided_slice %3 {offsets = [0, 40], sizes = [16, 8], strides = [1, 1]} : vector<16x64xf32> to vector<16x8xf32>
    %cst_12 = arith.constant dense<0.000000e+00> : vector<8x16xf32>
    %27 = tpu.matmul %24, %25, %cst_12 {dimension_numbers = #tpu.dot_dimension_numbers<[1], [1], [0], [0], [0, 0, 1, 0], [], []>} : vector<8x8xf32>, vector<16x8xf32>, vector<8x16xf32> -> vector<8x16xf32>
    %cst_13 = arith.constant 0.353553385 : f32
    %28 = vector.broadcast %cst_13 : f32 to vector<8x16xf32>
    %29 = arith.mulf %27, %28 : vector<8x16xf32>
    %30 = arith.addf %29, %5 : vector<8x16xf32>
    %cst_14 = arith.constant dense<0xFF800000> : vector<8xf32>
    %31 = vector.multi_reduction <maximumf>, %30, %cst_14 [1] : vector<8x16xf32> to vector<8xf32>
    %32 = vector.shape_cast %31 : vector<8xf32> to vector<8x1xf32>
    %33 = vector.broadcast %32 : vector<8x1xf32> to vector<8x16xf32>
    %34 = arith.subf %30, %33 : vector<8x16xf32>
    %35 = math.exp %34 : vector<8x16xf32>
    %cst_15 = arith.constant dense<0.000000e+00> : vector<8xf32>
    %36 = vector.multi_reduction <add>, %35, %cst_15 [1] : vector<8x16xf32> to vector<8xf32>
    %37 = vector.shape_cast %36 : vector<8xf32> to vector<8x1xf32>
    %38 = tpu.reciprocal %37 {approx = true} : vector<8x1xf32> -> vector<8x1xf32>
    %39 = vector.broadcast %38 : vector<8x1xf32> to vector<8x16xf32>
    %40 = arith.mulf %35, %39 : vector<8x16xf32>
    %cst_16 = arith.constant dense<0.000000e+00> : vector<8x8xf32>
    %41 = tpu.matmul %40, %26, %cst_16 {dimension_numbers = #tpu.dot_dimension_numbers<[1], [0], [0], [1], [0, 0, 1, 1], [], []>} : vector<8x16xf32>, vector<16x8xf32>, vector<8x8xf32> -> vector<8x8xf32>
    %42 = vector.extract_strided_slice %1 {offsets = [0, 16], sizes = [8, 8], strides = [1, 1]} : vector<8x32xf32> to vector<8x8xf32>
    %43 = vector.extract_strided_slice %3 {offsets = [0, 16], sizes = [16, 8], strides = [1, 1]} : vector<16x64xf32> to vector<16x8xf32>
    %44 = vector.extract_strided_slice %3 {offsets = [0, 48], sizes = [16, 8], strides = [1, 1]} : vector<16x64xf32> to vector<16x8xf32>
    %cst_17 = arith.constant dense<0.000000e+00> : vector<8x16xf32>
    %45 = tpu.matmul %42, %43, %cst_17 {dimension_numbers = #tpu.dot_dimension_numbers<[1], [1], [0], [0], [0, 0, 1, 0], [], []>} : vector<8x8xf32>, vector<16x8xf32>, vector<8x16xf32> -> vector<8x16xf32>
    %cst_18 = arith.constant 0.353553385 : f32
    %46 = vector.broadcast %cst_18 : f32 to vector<8x16xf32>
    %47 = arith.mulf %45, %46 : vector<8x16xf32>
    %48 = arith.addf %47, %5 : vector<8x16xf32>
    %cst_19 = arith.constant dense<0xFF800000> : vector<8xf32>
    %49 = vector.multi_reduction <maximumf>, %48, %cst_19 [1] : vector<8x16xf32> to vector<8xf32>
    %50 = vector.shape_cast %49 : vector<8xf32> to vector<8x1xf32>
    %51 = vector.broadcast %50 : vector<8x1xf32> to vector<8x16xf32>
    %52 = arith.subf %48, %51 : vector<8x16xf32>
    %53 = math.exp %52 : vector<8x16xf32>
    %cst_20 = arith.constant dense<0.000000e+00> : vector<8xf32>
    %54 = vector.multi_reduction <add>, %53, %cst_20 [1] : vector<8x16xf32> to vector<8xf32>
    %55 = vector.shape_cast %54 : vector<8xf32> to vector<8x1xf32>
    %56 = tpu.reciprocal %55 {approx = true} : vector<8x1xf32> -> vector<8x1xf32>
    %57 = vector.broadcast %56 : vector<8x1xf32> to vector<8x16xf32>
    %58 = arith.mulf %53, %57 : vector<8x16xf32>
    %cst_21 = arith.constant dense<0.000000e+00> : vector<8x8xf32>
    %59 = tpu.matmul %58, %44, %cst_21 {dimension_numbers = #tpu.dot_dimension_numbers<[1], [0], [0], [1], [0, 0, 1, 1], [], []>} : vector<8x16xf32>, vector<16x8xf32>, vector<8x8xf32> -> vector<8x8xf32>
    %60 = vector.extract_strided_slice %1 {offsets = [0, 24], sizes = [8, 8], strides = [1, 1]} : vector<8x32xf32> to vector<8x8xf32>
    %61 = vector.extract_strided_slice %3 {offsets = [0, 24], sizes = [16, 8], strides = [1, 1]} : vector<16x64xf32> to vector<16x8xf32>
    %62 = vector.extract_strided_slice %3 {offsets = [0, 56], sizes = [16, 8], strides = [1, 1]} : vector<16x64xf32> to vector<16x8xf32>
    %cst_22 = arith.constant dense<0.000000e+00> : vector<8x16xf32>
    %63 = tpu.matmul %60, %61, %cst_22 {dimension_numbers = #tpu.dot_dimension_numbers<[1], [1], [0], [0], [0, 0, 1, 0], [], []>} : vector<8x8xf32>, vector<16x8xf32>, vector<8x16xf32> -> vector<8x16xf32>
    %cst_23 = arith.constant 0.353553385 : f32
    %64 = vector.broadcast %cst_23 : f32 to vector<8x16xf32>
    %65 = arith.mulf %63, %64 : vector<8x16xf32>
    %66 = arith.addf %65, %5 : vector<8x16xf32>
    %cst_24 = arith.constant dense<0xFF800000> : vector<8xf32>
    %67 = vector.multi_reduction <maximumf>, %66, %cst_24 [1] : vector<8x16xf32> to vector<8xf32>
    %68 = vector.shape_cast %67 : vector<8xf32> to vector<8x1xf32>
    %69 = vector.broadcast %68 : vector<8x1xf32> to vector<8x16xf32>
    %70 = arith.subf %66, %69 : vector<8x16xf32>
    %71 = math.exp %70 : vector<8x16xf32>
    %cst_25 = arith.constant dense<0.000000e+00> : vector<8xf32>
    %72 = vector.multi_reduction <add>, %71, %cst_25 [1] : vector<8x16xf32> to vector<8xf32>
    %73 = vector.shape_cast %72 : vector<8xf32> to vector<8x1xf32>
    %74 = tpu.reciprocal %73 {approx = true} : vector<8x1xf32> -> vector<8x1xf32>
    %75 = vector.broadcast %74 : vector<8x1xf32> to vector<8x16xf32>
    %76 = arith.mulf %71, %75 : vector<8x16xf32>
    %cst_26 = arith.constant dense<0.000000e+00> : vector<8x8xf32>
    %77 = tpu.matmul %76, %62, %cst_26 {dimension_numbers = #tpu.dot_dimension_numbers<[1], [0], [0], [1], [0, 0, 1, 1], [], []>} : vector<8x16xf32>, vector<16x8xf32>, vector<8x8xf32> -> vector<8x8xf32>
    %78 = tpu.concatenate %23, %41, %59, %77 in 1 : vector<8x8xf32>, vector<8x8xf32>, vector<8x8xf32>, vector<8x8xf32> -> vector<8x32xf32>
    %c0_27 = arith.constant 0 : index
    %c0_28 = arith.constant 0 : index
    %c0_29 = arith.constant 0 : index
    %79 = vector.load %arg5[%c0_27, %c0_28, %c0_29] : memref<1x8x32xf32, #tpu.memory_space<vmem>>, vector<1x8x32xf32>
    %80 = vector.shape_cast %79 : vector<1x8x32xf32> to vector<8x32xf32>
    %81 = vector.shape_cast %78 : vector<8x32xf32> to vector<1x8x32xf32>
    tpu.vector_store %arg5[%c0_27, %c0_28, %c0_29], %81 {strides = array<i32>} : memref<1x8x32xf32, #tpu.memory_space<vmem>>, vector<1x8x32xf32>,
    return
  }
  func.func @transform_0(%arg0: i32, %arg1: i32) -> (i32, i32, i32) {
    %c0_i32 = arith.constant 0 : i32
    %c0_i32_0 = arith.constant 0 : i32
    return %arg0, %arg1, %c0_i32 : i32, i32, i32
  }
  func.func @transform_1(%arg0: i32, %arg1: i32) -> (i32, i32, i32) {
    %c0_i32 = arith.constant 0 : i32
    %c0_i32_0 = arith.constant 0 : i32
    %c0_i32_1 = arith.constant 0 : i32
    return %arg0, %c0_i32, %c0_i32_0 : i32, i32, i32
  }
  func.func @transform_2(%arg0: i32, %arg1: i32) -> (i32, i32, i32) {
    %c0_i32 = arith.constant 0 : i32
    %c0_i32_0 = arith.constant 0 : i32
    return %arg0, %arg1, %c0_i32 : i32, i32, i32
  }
  func.func @transform_3(%arg0: i32, %arg1: i32) -> (i32, i32, i32) {
    %c0_i32 = arith.constant 0 : i32
    %c0_i32_0 = arith.constant 0 : i32
    return %arg0, %arg1, %c0_i32 : i32, i32, i32
  }
}

module attributes {stable_mosaic.version = 11 : i64} {
  func.func @_linear_kernel(%arg0: i32, %arg1: i32, %arg2: i32, %arg3: memref<8x32xf32, #tpu.memory_space<vmem>>, %arg4: memref<32x50xf32, #tpu.memory_space<vmem>>, %arg5: memref<1x50xf32, #tpu.memory_space<vmem>>, %arg6: memref<8x50xf32, #tpu.memory_space<vmem>>, %arg7: memref<8x50xf32, #tpu.memory_space<vmem>>) attributes {dimension_semantics = [#tpu.dimension_semantics<parallel>, #tpu.dimension_semantics<parallel>, #tpu.dimension_semantics<arbitrary>], iteration_bounds = array<i64: 2, 1, 1>, scalar_prefetch = 0 : i64, scratch_operands = 1 : i64, tpu.core_type = #tpu.core_type<tc>, window_params = [{transform_indices = @transform_0, window_bounds = array<i64: 8, 32>}, {transform_indices = @transform_1, window_bounds = array<i64: 32, 50>}, {transform_indices = @transform_2, window_bounds = array<i64: 1, 50>}, {transform_indices = @transform_3, window_bounds = array<i64: 8, 50>}]} {
    %c0_i32 = arith.constant 0 : i32
    %0 = arith.cmpi eq, %arg2, %c0_i32 : i32
    %1 = arith.extui %0 : i1 to i32
    %c0_i32_0 = arith.constant 0 : i32
    %2 = arith.cmpi ne, %1, %c0_i32_0 : i32
    scf.if %2 {
      %cst_10 = arith.constant 0.000000e+00 : f32
      %12 = vector.broadcast %cst_10 : f32 to vector<8x50xf32>
      %c0_11 = arith.constant 0 : index
      %c0_12 = arith.constant 0 : index
      %13 = vector.load %arg7[%c0_11, %c0_12] : memref<8x50xf32, #tpu.memory_space<vmem>>, vector<8x50xf32>
      tpu.vector_store %arg7[%c0_11, %c0_12], %12 {strides = array<i32>} : memref<8x50xf32, #tpu.memory_space<vmem>>, vector<8x50xf32>,
    } else {
    }
    %c0 = arith.constant 0 : index
    %c0_1 = arith.constant 0 : index
    %3 = vector.load %arg7[%c0, %c0_1] : memref<8x50xf32, #tpu.memory_space<vmem>>, vector<8x50xf32>
    %c0_2 = arith.constant 0 : index
    %c0_3 = arith.constant 0 : index
    %4 = vector.load %arg3[%c0_2, %c0_3] : memref<8x32xf32, #tpu.memory_space<vmem>>, vector<8x32xf32>
    %c0_4 = arith.constant 0 : index
    %c0_5 = arith.constant 0 : index
    %5 = vector.load %arg4[%c0_4, %c0_5] : memref<32x50xf32, #tpu.memory_space<vmem>>, vector<32x50xf32>
    %cst = arith.constant dense<0.000000e+00> : vector<8x50xf32>
    %6 = tpu.matmul %4, %5, %cst {dimension_numbers = #tpu.dot_dimension_numbers<[1], [0], [0], [1], [0, 0, 1, 1], [], []>} : vector<8x32xf32>, vector<32x50xf32>, vector<8x50xf32> -> vector<8x50xf32>
    %7 = arith.addf %3, %6 : vector<8x50xf32>
    %c0_6 = arith.constant 0 : index
    %c0_7 = arith.constant 0 : index
    %8 = vector.load %arg7[%c0_6, %c0_7] : memref<8x50xf32, #tpu.memory_space<vmem>>, vector<8x50xf32>
    tpu.vector_store %arg7[%c0_6, %c0_7], %7 {strides = array<i32>} : memref<8x50xf32, #tpu.memory_space<vmem>>, vector<8x50xf32>,
    %c0_i32_8 = arith.constant 0 : i32
    %9 = arith.cmpi eq, %arg2, %c0_i32_8 : i32
    %10 = arith.extui %9 : i1 to i32
    %c0_i32_9 = arith.constant 0 : i32
    %11 = arith.cmpi ne, %10, %c0_i32_9 : i32
    scf.if %11 {
      %c0_10 = arith.constant 0 : index
      %c0_11 = arith.constant 0 : index
      %12 = vector.load %arg7[%c0_10, %c0_11] : memref<8x50xf32, #tpu.memory_space<vmem>>, vector<8x50xf32>
      %c0_12 = arith.constant 0 : index
      %c0_13 = arith.constant 0 : index
      %13 = vector.load %arg5[%c0_12, %c0_13] : memref<1x50xf32, #tpu.memory_space<vmem>>, vector<1x50xf32>
      %14 = vector.broadcast %13 : vector<1x50xf32> to vector<8x50xf32>
      %15 = arith.addf %12, %14 : vector<8x50xf32>
      %c0_14 = arith.constant 0 : index
      %c0_15 = arith.constant 0 : index
      %16 = vector.load %arg6[%c0_14, %c0_15] : memref<8x50xf32, #tpu.memory_space<vmem>>, vector<8x50xf32>
      tpu.vector_store %arg6[%c0_14, %c0_15], %15 {strides = array<i32>} : memref<8x50xf32, #tpu.memory_space<vmem>>, vector<8x50xf32>,
    } else {
    }
    return
  }
  func.func @transform_0(%arg0: i32, %arg1: i32, %arg2: i32) -> (i32, i32) {
    %c0_i32 = arith.constant 0 : i32
    return %arg0, %arg2 : i32, i32
  }
  func.func @transform_1(%arg0: i32, %arg1: i32, %arg2: i32) -> (i32, i32) {
    %c0_i32 = arith.constant 0 : i32
    return %arg2, %arg1 : i32, i32
  }
  func.func @transform_2(%arg0: i32, %arg1: i32, %arg2: i32) -> (i32, i32) {
    %c0_i32 = arith.constant 0 : i32
    %c0_i32_0 = arith.constant 0 : i32
    return %c0_i32, %arg1 : i32, i32
  }
  func.func @transform_3(%arg0: i32, %arg1: i32, %arg2: i32) -> (i32, i32) {
    %c0_i32 = arith.constant 0 : i32
    return %arg0, %arg1 : i32, i32
  }
}

module attributes {stable_mosaic.version = 11 : i64} {
  func.func @_linear_add_ln_kernel(%arg0: i32, %arg1: i32, %arg2: memref<8x64xf32, #tpu.memory_space<vmem>>, %arg3: memref<64x32xf32, #tpu.memory_space<vmem>>, %arg4: memref<1x32xf32, #tpu.memory_space<vmem>>, %arg5: memref<8x32xf32, #tpu.memory_space<vmem>>, %arg6: memref<1x32xf32, #tpu.memory_space<vmem>>, %arg7: memref<1x32xf32, #tpu.memory_space<vmem>>, %arg8: memref<8x32xf32, #tpu.memory_space<vmem>>, %arg9: memref<8x32xf32, #tpu.memory_space<vmem>>) attributes {dimension_semantics = [#tpu.dimension_semantics<parallel>, #tpu.dimension_semantics<arbitrary>], iteration_bounds = array<i64: 2, 1>, scalar_prefetch = 0 : i64, scratch_operands = 1 : i64, tpu.core_type = #tpu.core_type<tc>, window_params = [{transform_indices = @transform_0, window_bounds = array<i64: 8, 64>}, {transform_indices = @transform_1, window_bounds = array<i64: 64, 32>}, {pipeline_mode = #tpu.pipeline_mode<synchronous>, transform_indices = @transform_2, window_bounds = array<i64: 1, 32>}, {transform_indices = @transform_3, window_bounds = array<i64: 8, 32>}, {pipeline_mode = #tpu.pipeline_mode<synchronous>, transform_indices = @transform_4, window_bounds = array<i64: 1, 32>}, {pipeline_mode = #tpu.pipeline_mode<synchronous>, transform_indices = @transform_5, window_bounds = array<i64: 1, 32>}, {transform_indices = @transform_6, window_bounds = array<i64: 8, 32>}]} {
    %c0_i32 = arith.constant 0 : i32
    %0 = arith.cmpi eq, %arg1, %c0_i32 : i32
    %1 = arith.extui %0 : i1 to i32
    %c0_i32_0 = arith.constant 0 : i32
    %2 = arith.cmpi ne, %1, %c0_i32_0 : i32
    scf.if %2 {
      %cst_10 = arith.constant 0.000000e+00 : f32
      %12 = vector.broadcast %cst_10 : f32 to vector<8x32xf32>
      %c0_11 = arith.constant 0 : index
      %c0_12 = arith.constant 0 : index
      %13 = vector.load %arg9[%c0_11, %c0_12] : memref<8x32xf32, #tpu.memory_space<vmem>>, vector<8x32xf32>
      tpu.vector_store %arg9[%c0_11, %c0_12], %12 {strides = array<i32>} : memref<8x32xf32, #tpu.memory_space<vmem>>, vector<8x32xf32>,
    } else {
    }
    %c0 = arith.constant 0 : index
    %c0_1 = arith.constant 0 : index
    %3 = vector.load %arg9[%c0, %c0_1] : memref<8x32xf32, #tpu.memory_space<vmem>>, vector<8x32xf32>
    %c0_2 = arith.constant 0 : index
    %c0_3 = arith.constant 0 : index
    %4 = vector.load %arg2[%c0_2, %c0_3] : memref<8x64xf32, #tpu.memory_space<vmem>>, vector<8x64xf32>
    %c0_4 = arith.constant 0 : index
    %c0_5 = arith.constant 0 : index
    %5 = vector.load %arg3[%c0_4, %c0_5] : memref<64x32xf32, #tpu.memory_space<vmem>>, vector<64x32xf32>
    %cst = arith.constant dense<0.000000e+00> : vector<8x32xf32>
    %6 = tpu.matmul %4, %5, %cst {dimension_numbers = #tpu.dot_dimension_numbers<[1], [0], [0], [1], [0, 0, 1, 1], [], []>} : vector<8x64xf32>, vector<64x32xf32>, vector<8x32xf32> -> vector<8x32xf32>
    %7 = arith.addf %3, %6 : vector<8x32xf32>
    %c0_6 = arith.constant 0 : index
    %c0_7 = arith.constant 0 : index
    %8 = vector.load %arg9[%c0_6, %c0_7] : memref<8x32xf32, #tpu.memory_space<vmem>>, vector<8x32xf32>
    tpu.vector_store %arg9[%c0_6, %c0_7], %7 {strides = array<i32>} : memref<8x32xf32, #tpu.memory_space<vmem>>, vector<8x32xf32>,
    %c0_i32_8 = arith.constant 0 : i32
    %9 = arith.cmpi eq, %arg1, %c0_i32_8 : i32
    %10 = arith.extui %9 : i1 to i32
    %c0_i32_9 = arith.constant 0 : i32
    %11 = arith.cmpi ne, %10, %c0_i32_9 : i32
    scf.if %11 {
      %c0_10 = arith.constant 0 : index
      %c0_11 = arith.constant 0 : index
      %12 = vector.load %arg9[%c0_10, %c0_11] : memref<8x32xf32, #tpu.memory_space<vmem>>, vector<8x32xf32>
      %c0_12 = arith.constant 0 : index
      %c0_13 = arith.constant 0 : index
      %13 = vector.load %arg4[%c0_12, %c0_13] : memref<1x32xf32, #tpu.memory_space<vmem>>, vector<1x32xf32>
      %14 = vector.broadcast %13 : vector<1x32xf32> to vector<8x32xf32>
      %15 = arith.addf %12, %14 : vector<8x32xf32>
      %c0_14 = arith.constant 0 : index
      %c0_15 = arith.constant 0 : index
      %16 = vector.load %arg5[%c0_14, %c0_15] : memref<8x32xf32, #tpu.memory_space<vmem>>, vector<8x32xf32>
      %17 = arith.addf %15, %16 : vector<8x32xf32>
      %cst_16 = arith.constant dense<0.000000e+00> : vector<8xf32>
      %18 = vector.multi_reduction <add>, %17, %cst_16 [1] : vector<8x32xf32> to vector<8xf32>
      %19 = vector.shape_cast %18 : vector<8xf32> to vector<8x1xf32>
      %cst_17 = arith.constant 3.200000e+01 : f32
      %20 = vector.broadcast %cst_17 : f32 to vector<8x1xf32>
      %21 = arith.divf %19, %20 : vector<8x1xf32>
      %22 = vector.broadcast %21 : vector<8x1xf32> to vector<8x32xf32>
      %23 = arith.subf %17, %22 : vector<8x32xf32>
      %24 = arith.mulf %23, %23 : vector<8x32xf32>
      %cst_18 = arith.constant dense<0.000000e+00> : vector<8xf32>
      %25 = vector.multi_reduction <add>, %24, %cst_18 [1] : vector<8x32xf32> to vector<8xf32>
      %26 = vector.shape_cast %25 : vector<8xf32> to vector<8x1xf32>
      %cst_19 = arith.constant 3.200000e+01 : f32
      %27 = vector.broadcast %cst_19 : f32 to vector<8x1xf32>
      %28 = arith.divf %26, %27 : vector<8x1xf32>
      %cst_20 = arith.constant 9.99999974E-6 : f32
      %29 = vector.broadcast %cst_20 : f32 to vector<8x1xf32>
      %30 = arith.addf %28, %29 : vector<8x1xf32>
      %31 = math.rsqrt %30 : vector<8x1xf32>
      %32 = vector.broadcast %31 : vector<8x1xf32> to vector<8x32xf32>
      %33 = arith.mulf %23, %32 : vector<8x32xf32>
      %c0_21 = arith.constant 0 : index
      %c0_22 = arith.constant 0 : index
      %34 = vector.load %arg6[%c0_21, %c0_22] : memref<1x32xf32, #tpu.memory_space<vmem>>, vector<1x32xf32>
      %35 = vector.broadcast %34 : vector<1x32xf32> to vector<8x32xf32>
      %36 = arith.mulf %33, %35 : vector<8x32xf32>
      %c0_23 = arith.constant 0 : index
      %c0_24 = arith.constant 0 : index
      %37 = vector.load %arg7[%c0_23, %c0_24] : memref<1x32xf32, #tpu.memory_space<vmem>>, vector<1x32xf32>
      %38 = vector.broadcast %37 : vector<1x32xf32> to vector<8x32xf32>
      %39 = arith.addf %36, %38 : vector<8x32xf32>
      %c0_25 = arith.constant 0 : index
      %c0_26 = arith.constant 0 : index
      %40 = vector.load %arg8[%c0_25, %c0_26] : memref<8x32xf32, #tpu.memory_space<vmem>>, vector<8x32xf32>
      tpu.vector_store %arg8[%c0_25, %c0_26], %39 {strides = array<i32>} : memref<8x32xf32, #tpu.memory_space<vmem>>, vector<8x32xf32>,
    } else {
    }
    return
  }
  func.func @transform_0(%arg0: i32, %arg1: i32) -> (i32, i32) {
    %c0_i32 = arith.constant 0 : i32
    return %arg0, %arg1 : i32, i32
  }
  func.func @transform_1(%arg0: i32, %arg1: i32) -> (i32, i32) {
    %c0_i32 = arith.constant 0 : i32
    %c0_i32_0 = arith.constant 0 : i32
    return %arg1, %c0_i32 : i32, i32
  }
  func.func @transform_2(%arg0: i32, %arg1: i32) -> (i32, i32) {
    %c0_i32 = arith.constant 0 : i32
    %c0_i32_0 = arith.constant 0 : i32
    %c0_i32_1 = arith.constant 0 : i32
    return %c0_i32, %c0_i32_0 : i32, i32
  }
  func.func @transform_3(%arg0: i32, %arg1: i32) -> (i32, i32) {
    %c0_i32 = arith.constant 0 : i32
    %c0_i32_0 = arith.constant 0 : i32
    return %arg0, %c0_i32 : i32, i32
  }
  func.func @transform_4(%arg0: i32, %arg1: i32) -> (i32, i32) {
    %c0_i32 = arith.constant 0 : i32
    %c0_i32_0 = arith.constant 0 : i32
    %c0_i32_1 = arith.constant 0 : i32
    return %c0_i32, %c0_i32_0 : i32, i32
  }
  func.func @transform_5(%arg0: i32, %arg1: i32) -> (i32, i32) {
    %c0_i32 = arith.constant 0 : i32
    %c0_i32_0 = arith.constant 0 : i32
    %c0_i32_1 = arith.constant 0 : i32
    return %c0_i32, %c0_i32_0 : i32, i32
  }
  func.func @transform_6(%arg0: i32, %arg1: i32) -> (i32, i32) {
    %c0_i32 = arith.constant 0 : i32
    %c0_i32_0 = arith.constant 0 : i32
    return %arg0, %c0_i32 : i32, i32
  }
}

</mosaic_0001>

<bundles_post_ra>
// kernel: decoder_forward_pallas.23
= control target key start
LH: loop header
LB: loop body
LE: loop exit
PB: predicated region body
PF: predicated region fallthrough
CT: control target
= control target key end

     0   :  { %s662_s21 = smov 0   ;;  %s664_s22 = smov 0   ;;  %s730_s0 = inlined_call_operand.vmem [shape: f32[16,32], index: 0, kind: input, shape index: {}]   ;;  %s731_s1 = inlined_call_operand.vmem [shape: f32[32,32], index: 1, kind: input, shape index: {}]   ;;  %s732_s2 = inlined_call_operand.vmem [shape: f32[1,32], index: 2, kind: input, shape index: {}]   ;;  %s733_s3 = inlined_call_operand.vmem [shape: f32[16,32], index: 3, kind: input, shape index: {}]   ;;  %s734_s4 = inlined_call_operand.vmem [shape: f32[1,32], index: 4, kind: input, shape index: {}]   ;;  %s735_s5 = inlined_call_operand.vmem [shape: f32[1,32], index: 5, kind: input, shape index: {}]   ;;  %s736_s6 = inlined_call_operand.vmem [shape: f32[16,32], index: 6, kind: output, shape index: {}]  }
   0x1   :  { %s666_s23 = smov 0  }
   0x2 LB: > { %s28_s24 = sadd.s32 1, %s618_s22  ;;  %p539_p0 = scmp.ge.s32.totalorder %s622_s23, 1  ;;  %s622_s23 = sphi %s666_s23, %s16_s23   ;;  %s618_s22 = sphi %s664_s22, %s738_s22   ;;  %s614_s21 = sphi %s662_s21, %s737_s21  }
   0x3   : > { %p30_p1 = scmp.ge.s32.totalorder %s28_s24, 2  ;;  %p248_p2 = scmp.lt.s32.totalorder %s622_s23, 3 }
   0x5   : > { %s740_s24 = smov (%p30_p1, %s28_s24), 0  ;;  %p249_p3 = pnand %p539_p0, %p248_p2 }
   0x6   : > { %v317_v0 = vld [vmem:[%s731_s1] sm:$0xff] (!%p249_p3)  ;;  %v318_v1 = vld [vmem:[%s731_s1 + $0x8] sm:$0xff] (!%p249_p3)  ;;  %v319_v2 = vld [vmem:[%s731_s1 + $0x10] sm:$0xff] (!%p249_p3)  ;;  %vm313_vm0 = vcmask (!%p249_p3), 261120   ;;  %v624_v3 = vmov (!%p249_p3), 0.0|0.0   ;;  %v625_v6 = vmov (!%p249_p3), 0.0  }
   0x7   : > { %252 = sbr.rel (%p249_p3) target bundleno = 558 (0x22e), region = 44  ;;  %565 = vmatprep.subr.bf16.mxu0 (!%p249_p3), %v624_v3  ;;  %v566_v4 = vpack.c.bf16 (!%p249_p3), %v318_v1, %v317_v0  ;;  %v320_v5 = vld [vmem:[%s731_s1 + $0x18] sm:$0xff] (!%p249_p3)  ;;  %314 = vst.msk [vmem:[#allocation2] sm:$0xff] (!%p249_p3), %vm313_vm0, %v625_v6  ;;  %p288_p4 = scmp.lt.s32.totalorder (!%p249_p3), %s614_s21, 1  ;;  %vm626_vm1 = vmmov (!%p249_p3), 0  }
   0x8   : > { %562 = vmatprep.mubr.msk.f32.mxu0 (!%p249_p3), %vm626_vm1, %v625_v6  ;;  %v569_v7 = vpack.c.bf16 (!%p249_p3), %v320_v5, %v319_v2  ;;  %v544_v13 = vld [vmem:[%s732_s2] ss:$0 sm:$0xff] (!%p249_p3) }
   0x9   : > { %567 = vmatpush3.bf16.msra.mxu0 (!%p249_p3), %v566_v4  ;;  %v545_v28 = vld [vmem:[%s734_s4] ss:$0 sm:$0xff] (!%p249_p3) }
   0xa   : > { %568 = vmatprep.subr.bf16.mxu0 (!%p249_p3), %v624_v3  ;;  %v546_v30 = vld [vmem:[%s735_s5] ss:$0 sm:$0xff] (!%p249_p3) }
   0xd   : > { %570 = vmatpush3.bf16.msra.mxu0 (!%p249_p3), %v569_v7 }
   0xe   : > { %s742_s21 = smov (!%p288_p4, %s614_s21), 1  ;;  %v315_v9 = vld [vmem:[#allocation2] sm:$0xff] }
   0xf   : > { %s693_s9 = sshll.u32 %s742_s21, 3 }
  0x10   : > { %s294_s12 = scalar_lea.vmem %s730_s0, %s693_s9  ;;  %s304_s15 = scalar_lea.vmem %s733_s3, %s693_s9 }
  0x11   : > { %v316_v8 = vld [vmem:[%s294_s12] sm:$0xff]  ;;  %s308_s27 = scalar_lea.vmem %s736_s6, %s693_s9 }
  0x12   : > { %563 = vmatmul.mubr.msk.f32.vlgmr.msra.gmra.mrb[0].mxu0 %vm313_vm0, %v316_v8  ;;  %v409_v15 = vld [vmem:[%s304_s15] sm:$0xff] }
  0xe5   : > { %v391_v10 = vpop.f32.mrb[0].mxu0 }
  0xe6   : > { %v395_v11 = vadd.f32 %v391_v10, %v315_v9  ;;  %v564_v12 = vpop.f32.mrb[1].mxu0 }
  0xe8   : > { %396 = vst.msk [vmem:[#allocation2] sm:$0xff] %vm313_vm0, %v395_v11 }
  0xef   : > { %v400_v14 = vld [vmem:[#allocation2] sm:$0xff] }
  0xf0   : > { %v408_v16 = vadd.f32 %v544_v13, %v400_v14 }
  0xf2   : > { %v410_v17 = vadd.f32 %v409_v15, %v408_v16 }
  0xf4   : > { %v411_v18 = vsel %vm313_vm0, %v410_v17, 0.0 }
  0xf5   : > { %412 = vadd.xlane.f32.xlu0 %v411_v18 }
 0x182   : > { %v413_v19 = vpop.xlane.xlu0 %412 }
 0x183   : > { %v415_v20 = vmul.f32 0.03125, %v413_v19 }
 0x185   : > { %v416_v21 = vsub.f32 %v410_v17, %v415_v20 }
 0x187   : > { %v417_v22 = vmul.f32 %v416_v21, %v416_v21 }
 0x189   : > { %v418_v23 = vsel %vm313_vm0, %v417_v22, 0.0 }
 0x18a   : > { %419 = vadd.xlane.f32.xlu0 %v418_v23 }
 0x217   : > { %v420_v24 = vpop.xlane.xlu0 %419 }
 0x218   : > { %v421_v25 = vmul.f32 0.03125, %v420_v24 }
 0x21a   : > { %v422_v26 = vadd.f32 1e-05, %v421_v25 }
 0x21c   : > { %598 = vrsqrt.f32 %v422_v26 }
 0x226   : > { %v599_v27 = vpop.eup %598 }
 0x227   : > { %v424_v29 = vmul.f32 %v599_v27, %v416_v21 }
 0x229   : > { %v432_v31 = vmul.f32 %v545_v28, %v424_v29 }
 0x22b   : > { %v440_v32 = vadd.f32 %v546_v30, %v432_v31 }
 0x22d   : > { %441 = vst.msk [vmem:[%s308_s27] sm:$0xff] %vm313_vm0, %v440_v32 }
 0x22e PF: > { %s16_s23 = sadd.s32 1, %s622_s23   ;;  %s737_s21 = smov %s618_s22 }
 0x22f   : > { %p13_p5 = scmp.ge.s32.totalorder %s16_s23, 4   ;;  %s738_s22 = smov %s740_s24 }
 0x231   :  { %15 = sbr.rel (!%p13_p5) target bundleno = 2 (0x2), region = 88 }

// kernel: decoder_forward_pallas.20
= control target key start
LH: loop header
LB: loop body
LE: loop exit
PB: predicated region body
PF: predicated region fallthrough
CT: control target
= control target key end

     0   :  { %s354_s9 = smov 0   ;;  %s331_s10 = smov 0   ;;  %s368_s0 = inlined_call_operand.vmem [shape: f32[2,2,128], index: 0, kind: input, shape index: {}, may-alias: {0,2}]   ;;  %s369_s1 = inlined_call_operand.vmem [shape: f32[2,128], index: 1, kind: input, shape index: {}]   ;;  %s370_s2 = inlined_call_operand.vmem [shape: f32[2,2,128], index: 2, kind: output, shape index: {}, may-alias: {0,2}]  }
   0x1   :  { %s335_s11 = smov 0  }
   0x2 LB: > { %s21_s12 = sadd.s32 1, %s333_s10  ;;  %p286_p0 = scmp.ge.s32.totalorder %s337_s11, 1  ;;  %s337_s11 = sphi %s335_s11, %s12_s11   ;;  %s333_s10 = sphi %s331_s10, %s332_s10   ;;  %s329_s9 = sphi %s354_s9, %s371_s9  }
   0x3   : > { %p22_p1 = scmp.ge.s32.totalorder %s21_s12, 2  ;;  %p139_p2 = scmp.lt.s32.totalorder %s337_s11, 3 }
   0x5   : > { %s373_s12 = smov (%p22_p1, %s21_s12), 0  ;;  %p140_p3 = pnand %p286_p0, %p139_p2 }
   0x6   : > { %p169_p4 = scmp.lt.s32.totalorder (!%p140_p3), %s329_s9, 1  ;;  %v188_v0 = vld [vmem:[%s369_s1] sm:$0x3] (!%p140_p3) }
   0x7   : > { %143 = sbr.rel (%p140_p3) target bundleno = 21 (0x15), region = 28 }
   0xe   : > { %s375_s9 = smov (!%p169_p4, %s329_s9), 1 }
   0xf   : > { %s287_s13 = sshll.u32 %s375_s9, 1 }
  0x10   : > { %s175_s18 = scalar_lea.vmem %s368_s0, %s287_s13  ;;  %s186_s21 = scalar_lea.vmem %s370_s2, %s287_s13 }
  0x11   : > { %v187_v1 = vld [vmem:[%s175_s18] sm:$0x3] }
  0x12   : > { %v189_v2 = vadd.f32 %v188_v0, %v187_v1 }
  0x14   : > { %190 = vst [vmem:[%s186_s21] sm:$0x3] %v189_v2 }
  0x15 PF: > { %s12_s11 = sadd.s32 1, %s337_s11   ;;  %s371_s9 = smov %s333_s10 }
  0x16   : > { %p9_p5 = scmp.ge.s32.totalorder %s12_s11, 4   ;;  %s332_s10 = smov %s373_s12  }
  0x18   :  { %11 = sbr.rel (!%p9_p5) target bundleno = 2 (0x2), region = 61 }

// kernel: decoder_forward_pallas.21
= control target key start
LH: loop header
LB: loop body
LE: loop exit
PB: predicated region body
PF: predicated region fallthrough
CT: control target
= control target key end

     0   :  { %s570_s12 = smov 0   ;;  %s572_s13 = smov 0   ;;  %s621_s0 = inlined_call_operand.vmem [shape: f32[16,32], index: 0, kind: input, shape index: {}]   ;;  %s622_s1 = inlined_call_operand.vmem [shape: f32[32,96], index: 1, kind: input, shape index: {}]   ;;  %s623_s2 = inlined_call_operand.vmem [shape: f32[1,96], index: 2, kind: input, shape index: {}]   ;;  %s624_s3 = inlined_call_operand.vmem [shape: f32[16,96], index: 3, kind: output, shape index: {}]  }
   0x1   :  { %s574_s14 = smov 0  }
   0x2 LB: > { %s32_s15 = sadd.s32 1, %s541_s13  ;;  %p467_p0 = scmp.ge.s32.totalorder %s545_s14, 1  ;;  %s545_s14 = sphi %s574_s14, %s13_s14   ;;  %s541_s13 = sphi %s572_s13, %s626_s13   ;;  %s537_s12 = sphi %s570_s12, %s625_s12  }
   0x3   : > { %p34_p1 = scmp.ge.s32.totalorder %s32_s15, 2  ;;  %p186_p2 = scmp.lt.s32.totalorder %s545_s14, 3 }
   0x5   : > { %s628_s15 = smov (%p34_p1, %s32_s15), 0  ;;  %p187_p3 = pnand %p467_p0, %p186_p2 }
   0x6   : > { %v259_v0 = vld [vmem:[%s622_s1] sm:$0xff] (!%p187_p3)  ;;  %v260_v1 = vld [vmem:[%s622_s1 + $0x8] sm:$0xff] (!%p187_p3)  ;;  %v261_v2 = vld [vmem:[%s622_s1 + $0x10] sm:$0xff] (!%p187_p3)  ;;  %vm255_vm0 = vcmask (!%p187_p3), 785408   ;;  %v547_v3 = vmov (!%p187_p3), 0.0|0.0   ;;  %v548_v6 = vmov (!%p187_p3), 0.0  }
   0x7   : > { %190 = sbr.rel (%p187_p3) target bundleno = 243 (0xf3), region = 32  ;;  %490 = vmatprep.subr.bf16.mxu0 (!%p187_p3), %v547_v3  ;;  %v491_v4 = vpack.c.bf16 (!%p187_p3), %v260_v1, %v259_v0  ;;  %v262_v5 = vld [vmem:[%s622_s1 + $0x18] sm:$0xff] (!%p187_p3)  ;;  %256 = vst.msk [vmem:[#allocation2] sm:$0xff] (!%p187_p3), %vm255_vm0, %v548_v6  ;;  %p225_p4 = scmp.lt.s32.totalorder (!%p187_p3), %s537_s12, 1  ;;  %vm549_vm1 = vmmov (!%p187_p3), 0   ;;  %vm263_vm2 = vcmask (!%p187_p3), 261120  }
   0x8   : > { %487 = vmatprep.mubr.msk.f32.mxu0 (!%p187_p3), %vm549_vm1, %v548_v6  ;;  %v494_v7 = vpack.c.bf16 (!%p187_p3), %v262_v5, %v261_v2  ;;  %v471_v13 = vld [vmem:[%s623_s2] ss:$0 sm:$0xff] (!%p187_p3) }
   0x9   : > { %492 = vmatpush3.bf16.msra.mxu0 (!%p187_p3), %v491_v4 }
   0xa   : > { %493 = vmatprep.subr.bf16.mxu0 (!%p187_p3), %v547_v3 }
   0xd   : > { %495 = vmatpush3.bf16.msra.mxu0 (!%p187_p3), %v494_v7 }
   0xe   : > { %s630_s12 = smov (!%p225_p4, %s537_s12), 1  ;;  %v257_v9 = vld [vmem:[#allocation2] sm:$0xff] }
   0xf   : > { %s468_s24 = sshll.u32 %s630_s12, 3 }
  0x10   : > { %s231_s27 = scalar_lea.vmem %s621_s0, %s468_s24  ;;  %s250_s5 = scalar_lea.vmem %s624_s3, %s468_s24 }
  0x11   : > { %v258_v8 = vld [vmem:[%s231_s27] sm:$0xff] }
  0x12   : > { %488 = vmatmul.mubr.msk.f32.vlgmr.msra.gmra.mrb[0].mxu0 %vm263_vm2, %v258_v8 }
  0xe5   : > { %v333_v10 = vpop.f32.mrb[0].mxu0 }
  0xe6   : > { %v337_v11 = vadd.f32 %v333_v10, %v257_v9  ;;  %v489_v12 = vpop.f32.mrb[1].mxu0 }
  0xe8   : > { %339 = vst.msk [vmem:[#allocation2] sm:$0xff] %vm255_vm0, %v337_v11 }
  0xef   : > { %v343_v14 = vld [vmem:[#allocation2] sm:$0xff] }
  0xf0   : > { %v351_v15 = vadd.f32 %v471_v13, %v343_v14 }
  0xf2   : > { %352 = vst.msk [vmem:[%s250_s5] sm:$0xff] %vm255_vm0, %v351_v15 }
  0xf3 PF: > { %s13_s14 = sadd.s32 1, %s545_s14   ;;  %s625_s12 = smov %s541_s13 }
  0xf4   : > { %p10_p5 = scmp.ge.s32.totalorder %s13_s14, 4   ;;  %s626_s13 = smov %s628_s15 }
  0xf6   :  { %12 = sbr.rel (!%p10_p5) target bundleno = 2 (0x2), region = 76 }

// kernel: decoder_forward_pallas.22
= control target key start
LH: loop header
LB: loop body
LE: loop exit
PB: predicated region body
PF: predicated region fallthrough
CT: control target
= control target key end

     0   :  { %s1229_s12 = smov 0   ;;  %s1231_s13 = smov 0   ;;  %s1332_s0 = inlined_call_operand.vmem [shape: f32[2,8,96], index: 0, kind: input, shape index: {}, may-alias: {0,1}]   ;;  %s1333_s1 = inlined_call_operand.vmem [shape: f32[2,8,96], index: 1, kind: input, shape index: {}, may-alias: {0,1}]   ;;  %s1334_s2 = inlined_call_operand.vmem [shape: f32[2,8,8], index: 2, kind: input, shape index: {}]   ;;  %s1335_s3 = inlined_call_operand.vmem [shape: f32[2,8,32], index: 3, kind: output, shape index: {}]  }
   0x1   :  { %s1233_s14 = smov 0  }
   0x2 LB: > { %s25_s15 = sadd.s32 1, %s1187_s13  ;;  %p1038_p0 = scmp.ge.s32.totalorder %s1191_s14, 1  ;;  %s1191_s14 = sphi %s1233_s14, %s13_s14   ;;  %s1187_s13 = sphi %s1231_s13, %s1337_s13   ;;  %s1183_s12 = sphi %s1229_s12, %s1336_s12  }
   0x3   : > { %p27_p1 = scmp.ge.s32.totalorder %s25_s15, 2  ;;  %p178_p2 = scmp.lt.s32.totalorder %s1191_s14, 3 }
   0x5   : > { %s1339_s15 = smov (%p27_p1, %s25_s15), 0  ;;  %p179_p3 = pnand %p1038_p0, %p178_p2 }
   0x6   : > { %p217_p4 = scmp.lt.s32.totalorder (!%p179_p3), %s1183_s12, 1  ;;  %v1193_v0 = vmov (!%p179_p3), 0.0   ;;  %vm1194_vm0 = vmmov (!%p179_p3), 0   ;;  %s1195_s20 = smov (!%p179_p3), 96   ;;  %vm248_vm1 = vcmask (!%p179_p3), 64512   ;;  %vm927_vm2 = vcmask (!%p179_p3), 130048  }
   0x7   : > { %182 = sbr.rel (%p179_p3) target bundleno = 1537 (0x601), region = 32  ;;  %1073 = vmatprep.subr.mxu0 (!%p179_p3), %v1193_v0  ;;  %1075 = vmatprep.mubr.msk.f32.mxu0 (!%p179_p3), %vm1194_vm0, %v1193_v0  ;;  %s1196_s24 = smov (!%p179_p3), 64   ;;  %vm929_vm3 = vcmask (!%p179_p3), 195584   ;;  %vm931_vm4 = vcmask (!%p179_p3), 261120  }
   0x8   : > { %1078 = vmatprep.subr.mxu1 (!%p179_p3), %v1193_v0  ;;  %1080 = vmatprep.mubr.msk.f32.mxu1 (!%p179_p3), %vm1194_vm0, %v1193_v0  ;;  %s1197_s25 = smov (!%p179_p3), 88   ;;  %s1198_s26 = smov (!%p179_p3), 120  }
   0x9   : > { %s1199_s27 = smov (!%p179_p3), 80   ;;  %s1200_s4 = smov (!%p179_p3), 72  }
   0xa   : > { %s1201_s5 = smov (!%p179_p3), 112   ;;  %s1202_s6 = smov (!%p179_p3), 104  }
   0xb   : > { %s1203_s7 = smov (!%p179_p3), 56   ;;  %s1204_s8 = smov (!%p179_p3), 40  }
   0xc   : > { %s1205_s9 = smov (!%p179_p3), 48   ;;  %s1206_s10 = smov (!%p179_p3), 8  }
   0xd   : > { %s1207_s11 = smov (!%p179_p3), 16  }
   0xe   : > { %s1341_s12 = smov (!%p217_p4, %s1183_s12), 1 }
   0xf   : > { %s1253_s16 = sshll.u32 %s1341_s12, 3  ;;  %s1208_s12 = smov 24  }
  0x10   : > { %s227_s19 = scalar_lea.vmem %s1333_s1, %s1253_s16  ;;  %s223_s23 = scalar_lea.vmem %s1332_s0, %s1253_s16 }
  0x11   : > { %v1259_v1 = vld [vmem:[%s227_s19] sm:$0xff]  ;;  %s234_s30 = scalar_lea.vmem %s1334_s2, %s1253_s16  ;;  %s241_s19 = scalar_lea.vmem %s1335_s3, %s1253_s16 }
  0x12   : > { %246 = vrot.lane.b32.xlu0 %v1259_v1, %s1195_s20  ;;  %v242_v3 = vld [vmem:[%s223_s23] sm:$0xff]  ;;  %337 = vrot.lane.b32.xlu1 %v1259_v1, %s1196_s24 }
  0x13   : > { %v244_v5 = vld [vmem:[%s234_s30] sm:$0xff] }
  0x16   : > { %415 = vrot.lane.b32.xlu1 %v1259_v1, %s1197_s25 }
  0x1a   : > { %413 = vrot.lane.b32.xlu1 %v242_v3, %s1198_s26 }
  0x1e   : > { %582 = vrot.lane.b32.xlu1 %v1259_v1, %s1199_s27 }
  0x84   : > { %v247_v2 = vpop.permute.xlu0 %246  ;;  %v338_v10 = vpop.permute.xlu1 %337 }
  0x85   : > { %1074 = vmatpush3.xpose.msk.msra.mxu0 %vm248_vm1, %v247_v2  ;;  %1079 = vmatpush3.msra.mxu1 %v338_v10 }
  0x86   : > { %1088 = vmatprep.subr.mxu0 %v1193_v0  ;;  %1083 = vmatprep.subr.mxu1 %v1193_v0 }
  0x88   : > { %1076 = vmatmul.mubr.msk.f32.vlgmr.msra.gmra.mrb[0].mxu0 %vm248_vm1, %v242_v3  ;;  %v416_v16 = vpop.permute.xlu1 %415 }
  0x89   : > { %1090 = vmatprep.mubr.msk.f32.mxu0 %vm1194_vm0, %v1193_v0 }
  0x8c   : > { %v414_v17 = vpop.permute.xlu1 %413 }
  0x90   : > { %v583_v18 = vpop.permute.xlu1 %582 }
 0x15b   : > { %v320_v4 = vpop.f32.mrb[0].mxu0 }
 0x15c   : > { %v324_v6 = vmul.f32 0.35355338, %v320_v4  ;;  %v1077_v7 = vpop.f32.mrb[1].mxu0 }
 0x15e   : > { %v325_v8 = vadd.f32 %v324_v6, %v244_v5 }
 0x160   : > { %v326_v9 = vsel %vm248_vm1, %v325_v8, -inf }
 0x161   : > { %327 = vmax.xlane.f32.xlu0 %v326_v9 }
 0x177   : > { %749 = vrot.lane.b32.xlu0 %v1259_v1, %s1200_s4 }
 0x1ee   : > { %v328_v11 = vpop.xlane.xlu0 %327 }
 0x1ef   : > { %v329_v12 = vsub.f32 %v325_v8, %v328_v11 }
 0x1f1   : > { %v330_v13 = vmul.f32 1.442695, %v329_v12 }
 0x1f2   : > { %v750_v23 = vpop.permute.xlu0 %749 }
 0x1f3   : > { %1153 = vpow2.f32 %v330_v13 }
 0x1fd   : > { %v1154_v14 = vpop.eup %1153 }
 0x1fe   : > { %v332_v15 = vsel %vm248_vm1, %v1154_v14, 0.0 }
 0x1ff   : > { %333 = vadd.xlane.f32.xlu1 %v332_v15 }
 0x210   : > { %580 = vrot.lane.b32.xlu1 %v242_v3, %s1201_s5 }
 0x214   : > { %747 = vrot.lane.b32.xlu1 %v242_v3, %s1202_s6 }
 0x28c   : > { %v334_v19 = vpop.xlane.xlu1 %333 }
 0x28d   : > { %1155 = vrcp.f32 %v334_v19 }
 0x290   : > { %v581_v22 = vpop.permute.xlu1 %580 }
 0x294   : > { %v748_v24 = vpop.permute.xlu1 %747 }
 0x297   : > { %v1156_v20 = vpop.eup %1155 }
 0x298   : > { %v336_v21 = vmul.f32 %v1156_v20, %v1154_v14 }
 0x29a   : > { %1081 = vmatmul.mubr.msk.f32.vlgmr.msra.gmra.mrb[0].mxu1 %vm248_vm1, %v336_v21 }
 0x29b   : > { %1084 = vmatpush3.xpose.msk.msra.mxu1 %vm248_vm1, %v416_v16  ;;  %1085 = vmatprep.mubr.msk.f32.mxu1 %vm1194_vm0, %v1193_v0 }
 0x29c   : > { %1093 = vmatprep.subr.mxu1 %v1193_v0 }
 0x29e   : > { %1086 = vmatmul.mubr.msk.f32.vlgmr.msra.gmra.mrb[2].mxu1 %vm248_vm1, %v414_v17 }
 0x29f   : > { %1094 = vmatpush3.xpose.msk.msra.mxu1 %vm248_vm1, %v583_v18  ;;  %1095 = vmatprep.mubr.msk.f32.mxu1 %vm1194_vm0, %v1193_v0 }
 0x2a0   : > { %1103 = vmatprep.subr.mxu1 %v1193_v0 }
 0x2a2   : > { %1096 = vmatmul.mubr.msk.f32.vlgmr.msra.gmra.mrb[4].mxu1 %vm248_vm1, %v581_v22 }
 0x2a3   : > { %1104 = vmatpush3.xpose.msk.msra.mxu1 %vm248_vm1, %v750_v23  ;;  %1105 = vmatprep.mubr.msk.f32.mxu1 %vm1194_vm0, %v1193_v0 }
 0x2a6   : > { %1106 = vmatmul.mubr.msk.f32.vlgmr.msra.gmra.mrb[6].mxu1 %vm248_vm1, %v748_v24 }
 0x36d   : > { %v1297_v25 = vpop.f32.mrb[0].mxu1 }
 0x36e   : > { %v1082_v26 = vpop.f32.mrb[1].mxu1 }
 0x371   : > { %v487_v27 = vpop.f32.mrb[2].mxu1 }
 0x372   : > { %v491_v28 = vmul.f32 0.35355338, %v487_v27  ;;  %v1087_v29 = vpop.f32.mrb[3].mxu1 }
 0x374   : > { %v492_v30 = vadd.f32 %v491_v28, %v244_v5 }
 0x375   : > { %v654_v31 = vpop.f32.mrb[4].mxu1 }
 0x376   : > { %v658_v32 = vmul.f32 0.35355338, %v654_v31  ;;  %v1097_v33 = vpop.f32.mrb[5].mxu1  ;;  %v493_v34 = vsel %vm248_vm1, %v492_v30, -inf }
 0x377   : > { %494 = vmax.xlane.f32.xlu1 %v493_v34 }
 0x378   : > { %v659_v35 = vadd.f32 %v658_v32, %v244_v5 }
 0x379   : > { %v821_v36 = vpop.f32.mrb[6].mxu1 }
 0x37a   : > { %v825_v37 = vmul.f32 0.35355338, %v821_v36  ;;  %v1107_v38 = vpop.f32.mrb[7].mxu1  ;;  %v660_v39 = vsel %vm248_vm1, %v659_v35, -inf }
 0x37b   : > { %661 = vmax.xlane.f32.xlu0 %v660_v39 }
 0x37c   : > { %v826_v40 = vadd.f32 %v825_v37, %v244_v5 }
 0x37e   : > { %v827_v41 = vsel %vm248_vm1, %v826_v40, -inf }
 0x37f   : > { %828 = vmax.xlane.f32.xlu1 %v827_v41 }
 0x390   : > { %504 = vrot.lane.b32.xlu1 %v1259_v1, %s1203_s7 }
 0x404   : > { %v495_v42 = vpop.xlane.xlu1 %494 }
 0x405   : > { %v496_v43 = vsub.f32 %v492_v30, %v495_v42 }
 0x407   : > { %v497_v44 = vmul.f32 1.442695, %v496_v43 }
 0x408   : > { %v662_v45 = vpop.xlane.xlu0 %661 }
 0x409   : > { %1157 = vpow2.f32 %v497_v44  ;;  %v663_v46 = vsub.f32 %v659_v35, %v662_v45 }
 0x40b   : > { %v664_v47 = vmul.f32 1.442695, %v663_v46 }
 0x40c   : > { %v829_v48 = vpop.xlane.xlu1 %828 }
 0x40d   : > { %1159 = vpow2.f32 %v664_v47  ;;  %v830_v49 = vsub.f32 %v826_v40, %v829_v48 }
 0x40f   : > { %v831_v50 = vmul.f32 1.442695, %v830_v49 }
 0x410   : > { %v505_v51 = vpop.permute.xlu1 %504 }
 0x411   : > { %1161 = vpow2.f32 %v831_v50  ;;  %1089 = vmatpush3.msra.mxu0 %v505_v51 }
 0x412   : > { %1098 = vmatprep.subr.mxu0 %v1193_v0 }
 0x413   : > { %v1158_v52 = vpop.eup %1157 }
 0x414   : > { %v499_v53 = vsel %vm248_vm1, %v1158_v52, 0.0 }
 0x415   : > { %500 = vadd.xlane.f32.xlu1 %v499_v53 }
 0x417   : > { %v1160_v54 = vpop.eup %1159 }
 0x418   : > { %v666_v55 = vsel %vm248_vm1, %v1160_v54, 0.0 }
 0x419   : > { %667 = vadd.xlane.f32.xlu1 %v666_v55 }
 0x41b   : > { %v1162_v56 = vpop.eup %1161 }
 0x41c   : > { %v833_v57 = vsel %vm248_vm1, %v1162_v56, 0.0 }
 0x41d   : > { %834 = vadd.xlane.f32.xlu0 %v833_v57 }
 0x42a   : > { %838 = vrot.lane.b32.xlu1 %v1259_v1, %s1204_s8 }
 0x433   : > { %671 = vrot.lane.b32.xlu0 %v1259_v1, %s1205_s9 }
 0x4a2   : > { %v501_v58 = vpop.xlane.xlu1 %500 }
 0x4a3   : > { %1163 = vrcp.f32 %v501_v58 }
 0x4a6   : > { %v668_v59 = vpop.xlane.xlu1 %667 }
 0x4a7   : > { %1165 = vrcp.f32 %v668_v59 }
 0x4aa   : > { %v835_v60 = vpop.xlane.xlu0 %834  ;;  %v839_v4 = vpop.permute.xlu1 %838 }
 0x4ab   : > { %1167 = vrcp.f32 %v835_v60 }
 0x4ad   : > { %v1164_v61 = vpop.eup %1163 }
 0x4ae   : > { %v503_v62 = vmul.f32 %v1164_v61, %v1158_v52  ;;  %v672_v63 = vpop.permute.xlu0 %671 }
 0x4b0   : > { %1091 = vmatmul.mubr.msk.f32.vlgmr.msra.gmra.mrb[2].mxu0 %vm248_vm1, %v503_v62 }
 0x4b1   : > { %v1166_v2 = vpop.eup %1165  ;;  %1099 = vmatpush3.msra.mxu0 %v672_v63  ;;  %1100 = vmatprep.mubr.msk.f32.mxu0 %vm1194_vm0, %v1193_v0 }
 0x4b2   : > { %v670_v3 = vmul.f32 %v1166_v2, %v1160_v54  ;;  %1108 = vmatprep.subr.mxu0 %v1193_v0 }
 0x4b4   : > { %1101 = vmatmul.mubr.msk.f32.vlgmr.msra.gmra.mrb[4].mxu0 %vm248_vm1, %v670_v3 }
 0x4b5   : > { %v1168_v1 = vpop.eup %1167  ;;  %1109 = vmatpush3.msra.mxu0 %v839_v4  ;;  %1110 = vmatprep.mubr.msk.f32.mxu0 %vm1194_vm0, %v1193_v0 }
 0x4b6   : > { %v837_v5 = vmul.f32 %v1168_v1, %v1162_v56 }
 0x4b8   : > { %1111 = vmatmul.mubr.msk.f32.vlgmr.msra.gmra.mrb[6].mxu0 %vm248_vm1, %v837_v5 }
 0x583   : > { %v576_v6 = vpop.f32.mrb[2].mxu0 }
 0x584   : > { %915 = vrot.lane.b32.xlu1 %v576_v6, %s1206_s10  ;;  %v1092_v7 = vpop.f32.mrb[3].mxu0 }
 0x587   : > { %v743_v8 = vpop.f32.mrb[4].mxu0 }
 0x588   : > { %919 = vrot.lane.b32.xlu0 %v743_v8, %s1207_s11  ;;  %v1102_v9 = vpop.f32.mrb[5].mxu0 }
 0x58b   : > { %v910_v10 = vpop.f32.mrb[6].mxu0 }
 0x58c   : > { %923 = vrot.lane.b32.xlu1 %v910_v10, %s1208_s12  ;;  %v1112_v11 = vpop.f32.mrb[7].mxu0 }
 0x5f6   : > { %v916_v12 = vpop.permute.xlu1 %915 }
 0x5f7   : > { %v926_v0 = vsel %vm248_vm1, %v1297_v25, %v916_v12 }
 0x5fa   : > { %v920_v13 = vpop.permute.xlu0 %919 }
 0x5fb   : > { %v928_v14 = vsel %vm927_vm2, %v926_v0, %v920_v13 }
 0x5fe   : > { %v924_v15 = vpop.permute.xlu1 %923 }
 0x5ff   : > { %v930_v16 = vsel %vm929_vm3, %v928_v14, %v924_v15 }
 0x600   : > { %932 = vst.msk [vmem:[%s241_s19] sm:$0xff] %vm931_vm4, %v930_v16 }
 0x601 PF: > { %s13_s14 = sadd.s32 1, %s1191_s14   ;;  %s1336_s12 = smov %s1187_s13 }
 0x602   : > { %p10_p5 = scmp.ge.s32.totalorder %s13_s14, 4   ;;  %s1337_s13 = smov %s1339_s15 }
 0x604   :  { %12 = sbr.rel (!%p10_p5) target bundleno = 2 (0x2), region = 68 }

// kernel: decoder_forward_pallas.24
= control target key start
LH: loop header
LB: loop body
LE: loop exit
PB: predicated region body
PF: predicated region fallthrough
CT: control target
= control target key end

     0   :  { %s569_s12 = smov 0   ;;  %s571_s13 = smov 0   ;;  %s621_s0 = inlined_call_operand.vmem [shape: f32[16,32], index: 0, kind: input, shape index: {}]   ;;  %s622_s1 = inlined_call_operand.vmem [shape: f32[32,32], index: 1, kind: input, shape index: {}]   ;;  %s623_s2 = inlined_call_operand.vmem [shape: f32[1,32], index: 2, kind: input, shape index: {}]   ;;  %s624_s3 = inlined_call_operand.vmem [shape: f32[16,32], index: 3, kind: output, shape index: {}]  }
   0x1   :  { %s573_s14 = smov 0  }
   0x2 LB: > { %s32_s15 = sadd.s32 1, %s540_s13  ;;  %p466_p0 = scmp.ge.s32.totalorder %s544_s14, 1  ;;  %s544_s14 = sphi %s573_s14, %s13_s14   ;;  %s540_s13 = sphi %s571_s13, %s626_s13   ;;  %s536_s12 = sphi %s569_s12, %s625_s12  }
   0x3   : > { %p34_p1 = scmp.ge.s32.totalorder %s32_s15, 2  ;;  %p186_p2 = scmp.lt.s32.totalorder %s544_s14, 3 }
   0x5   : > { %s628_s15 = smov (%p34_p1, %s32_s15), 0  ;;  %p187_p3 = pnand %p466_p0, %p186_p2 }
   0x6   : > { %v259_v0 = vld [vmem:[%s622_s1] sm:$0xff] (!%p187_p3)  ;;  %v260_v1 = vld [vmem:[%s622_s1 + $0x8] sm:$0xff] (!%p187_p3)  ;;  %v261_v2 = vld [vmem:[%s622_s1 + $0x10] sm:$0xff] (!%p187_p3)  ;;  %vm255_vm0 = vcmask (!%p187_p3), 261120   ;;  %v546_v3 = vmov (!%p187_p3), 0.0|0.0   ;;  %v547_v6 = vmov (!%p187_p3), 0.0  }
   0x7   : > { %190 = sbr.rel (%p187_p3) target bundleno = 243 (0xf3), region = 32  ;;  %489 = vmatprep.subr.bf16.mxu0 (!%p187_p3), %v546_v3  ;;  %v490_v4 = vpack.c.bf16 (!%p187_p3), %v260_v1, %v259_v0  ;;  %v262_v5 = vld [vmem:[%s622_s1 + $0x18] sm:$0xff] (!%p187_p3)  ;;  %256 = vst.msk [vmem:[#allocation2] sm:$0xff] (!%p187_p3), %vm255_vm0, %v547_v6  ;;  %p225_p4 = scmp.lt.s32.totalorder (!%p187_p3), %s536_s12, 1  ;;  %vm548_vm1 = vmmov (!%p187_p3), 0  }
   0x8   : > { %486 = vmatprep.mubr.msk.f32.mxu0 (!%p187_p3), %vm548_vm1, %v547_v6  ;;  %v493_v7 = vpack.c.bf16 (!%p187_p3), %v262_v5, %v261_v2  ;;  %v470_v13 = vld [vmem:[%s623_s2] ss:$0 sm:$0xff] (!%p187_p3) }
   0x9   : > { %491 = vmatpush3.bf16.msra.mxu0 (!%p187_p3), %v490_v4 }
   0xa   : > { %492 = vmatprep.subr.bf16.mxu0 (!%p187_p3), %v546_v3 }
   0xd   : > { %494 = vmatpush3.bf16.msra.mxu0 (!%p187_p3), %v493_v7 }
   0xe   : > { %s630_s12 = smov (!%p225_p4, %s536_s12), 1  ;;  %v257_v9 = vld [vmem:[#allocation2] sm:$0xff] }
   0xf   : > { %s467_s24 = sshll.u32 %s630_s12, 3 }
  0x10   : > { %s231_s27 = scalar_lea.vmem %s621_s0, %s467_s24  ;;  %s250_s5 = scalar_lea.vmem %s624_s3, %s467_s24 }
  0x11   : > { %v258_v8 = vld [vmem:[%s231_s27] sm:$0xff] }
  0x12   : > { %487 = vmatmul.mubr.msk.f32.vlgmr.msra.gmra.mrb[0].mxu0 %vm255_vm0, %v258_v8 }
  0xe5   : > { %v333_v10 = vpop.f32.mrb[0].mxu0 }
  0xe6   : > { %v337_v11 = vadd.f32 %v333_v10, %v257_v9  ;;  %v488_v12 = vpop.f32.mrb[1].mxu0 }
  0xe8   : > { %338 = vst.msk [vmem:[#allocation2] sm:$0xff] %vm255_vm0, %v337_v11 }
  0xef   : > { %v342_v14 = vld [vmem:[#allocation2] sm:$0xff] }
  0xf0   : > { %v350_v15 = vadd.f32 %v470_v13, %v342_v14 }
  0xf2   : > { %351 = vst.msk [vmem:[%s250_s5] sm:$0xff] %vm255_vm0, %v350_v15 }
  0xf3 PF: > { %s13_s14 = sadd.s32 1, %s544_s14   ;;  %s625_s12 = smov %s540_s13 }
  0xf4   : > { %p10_p5 = scmp.ge.s32.totalorder %s13_s14, 4   ;;  %s626_s13 = smov %s628_s15 }
  0xf6   :  { %12 = sbr.rel (!%p10_p5) target bundleno = 2 (0x2), region = 76 }

// kernel: decoder_forward_pallas.25
= control target key start
LH: loop header
LB: loop body
LE: loop exit
PB: predicated region body
PF: predicated region fallthrough
CT: control target
= control target key end

     0   :  { %s599_s12 = smov 0   ;;  %s601_s13 = smov 0   ;;  %s653_s0 = inlined_call_operand.vmem [shape: f32[32,32], index: 0, kind: input, shape index: {}]   ;;  %s654_s1 = inlined_call_operand.vmem [shape: f32[32,64], index: 1, kind: input, shape index: {}]   ;;  %s655_s2 = inlined_call_operand.vmem [shape: f32[1,64], index: 2, kind: input, shape index: {}]   ;;  %s656_s3 = inlined_call_operand.vmem [shape: f32[32,64], index: 3, kind: output, shape index: {}]  }
   0x1   :  { %s603_s14 = smov 0  }
   0x2 LB: > { %s32_s15 = sadd.s32 1, %s572_s13  ;;  %p494_p0 = scmp.ge.s32.totalorder %s576_s14, 1  ;;  %s576_s14 = sphi %s603_s14, %s13_s14   ;;  %s572_s13 = sphi %s601_s13, %s658_s13   ;;  %s568_s12 = sphi %s599_s12, %s657_s12  }
   0x3   : > { %p34_p1 = scmp.ge.s32.totalorder %s32_s15, 2  ;;  %p188_p2 = scmp.lt.s32.totalorder %s576_s14, 3 }
   0x5   : > { %s660_s15 = smov (%p34_p1, %s32_s15), 0  ;;  %p189_p3 = pnand %p494_p0, %p188_p2 }
   0x6   : > { %v270_v0 = vld [vmem:[%s654_s1] sm:$0xff] (!%p189_p3)  ;;  %v271_v1 = vld [vmem:[%s654_s1 + $0x8] sm:$0xff] (!%p189_p3)  ;;  %v272_v2 = vld [vmem:[%s654_s1 + $0x10] sm:$0xff] (!%p189_p3)  ;;  %s495_s22 = sshll.u32 (!%p189_p3), %s568_s12, 1  ;;  %vm263_vm0 = vcmask (!%p189_p3), 523264   ;;  %v578_v6 = vmov (!%p189_p3), 0.0  }
   0x7   : > { %192 = sbr.rel (%p189_p3) target bundleno = 245 (0xf5), region = 32  ;;  %v521_v3 = vpack.c.bf16 (!%p189_p3), %v271_v1, %v270_v0  ;;  %v273_v4 = vld [vmem:[%s654_s1 + $0x18] sm:$0xff] (!%p189_p3)  ;;  %p230_p4 = scmp.lt.s32.totalorder (!%p189_p3), %s495_s22, 3  ;;  %265 = vst.msk [vmem:[#allocation2 + $0x8] sm:$0xff] (!%p189_p3), %vm263_vm0, %v578_v6  ;;  %264 = vst.msk [vmem:[#allocation2] sm:$0xff] (!%p189_p3), %vm263_vm0, %v578_v6  ;;  %vm274_vm1 = vcmask (!%p189_p3), 261120  }
   0x8   : > { %v525_v5 = vpack.c.bf16 (!%p189_p3), %v273_v4, %v272_v2  ;;  %v501_v15 = vld [vmem:[%s655_s2] ss:$0 sm:$0xff] (!%p189_p3) }
   0x9   : > { %522 = vmatprep.subr.bf16.mxu0 (!%p189_p3), %v521_v3 }
   0xa   : > { %524 = vmatpush3.bf16.msra.mxu0 (!%p189_p3), %v521_v3 }
   0xb   : > { %526 = vmatprep.subr.bf16.mxu0 (!%p189_p3), %v525_v5 }
   0xe   : > { %s662_s22 = smov (!%p230_p4, %s495_s22), 3  ;;  %528 = vmatpush3.bf16.msra.mxu0 %v525_v5  ;;  %v267_v9 = vld [vmem:[#allocation2 + $0x8] sm:$0xff]  ;;  %v266_v10 = vld [vmem:[#allocation2] sm:$0xff] }
   0xf   : > { %s496_s25 = sshll.u32 %s662_s22, 3 }
  0x10   : > { %s236_s28 = scalar_lea.vmem %s653_s0, %s496_s25  ;;  %s257_s6 = scalar_lea.vmem %s656_s3, %s496_s25 }
  0x11   : > { %v268_v7 = vld [vmem:[%s236_s28] sm:$0xff]  ;;  %v269_v8 = vld [vmem:[%s236_s28 + $0x8] sm:$0xff] }
  0x12   : > { %518 = vmatprep.mubr.msk.f32.mxu0 %vm274_vm1, %v268_v7 }
  0x13   : > { %519 = vmatmul.mubr.msk.f32.vlgmr.msra.gmra.mrb[0].mxu0 %vm274_vm1, %v269_v8 }
  0xe6   : > { %v520_v11 = vpop.f32.mrb[0].mxu0 }
  0xe7   : > { %v357_v12 = vadd.f32 %v520_v11, %v267_v9  ;;  %v347_v13 = vpop.f32.mrb[1].mxu0 }
  0xe8   : > { %v356_v14 = vadd.f32 %v347_v13, %v266_v10 }
  0xe9   : > { %360 = vst.msk [vmem:[#allocation2 + $0x8] sm:$0xff] %vm263_vm0, %v357_v12 }
  0xea   : > { %359 = vst.msk [vmem:[#allocation2] sm:$0xff] %vm263_vm0, %v356_v14 }
  0xf0   : > { %v365_v16 = vld [vmem:[#allocation2 + $0x8] sm:$0xff] }
  0xf1   : > { %v364_v17 = vld [vmem:[#allocation2] sm:$0xff]  ;;  %v374_v19 = vadd.f32 %v501_v15, %v365_v16 }
  0xf2   : > { %v373_v18 = vadd.f32 %v501_v15, %v364_v17 }
  0xf3   : > { %376 = vst.msk [vmem:[%s257_s6 + $0x8] sm:$0xff] %vm263_vm0, %v374_v19 }
  0xf4   : > { %375 = vst.msk [vmem:[%s257_s6] sm:$0xff] %vm263_vm0, %v373_v18 }
  0xf5 PF: > { %s13_s14 = sadd.s32 1, %s576_s14   ;;  %s657_s12 = smov %s572_s13 }
  0xf6   : > { %p10_p5 = scmp.ge.s32.totalorder %s13_s14, 4   ;;  %s658_s13 = smov %s660_s15 }
  0xf8   :  { %12 = sbr.rel (!%p10_p5) target bundleno = 2 (0x2), region = 76 }

// kernel: decoder_forward_pallas.28
= control target key start
LH: loop header
LB: loop body
LE: loop exit
PB: predicated region body
PF: predicated region fallthrough
CT: control target
= control target key end

     0   :  { %s571_s12 = smov 0   ;;  %s573_s13 = smov 0   ;;  %s622_s0 = inlined_call_operand.vmem [shape: f32[16,32], index: 0, kind: input, shape index: {}]   ;;  %s623_s1 = inlined_call_operand.vmem [shape: f32[32,64], index: 1, kind: input, shape index: {}]   ;;  %s624_s2 = inlined_call_operand.vmem [shape: f32[1,64], index: 2, kind: input, shape index: {}]   ;;  %s625_s3 = inlined_call_operand.vmem [shape: f32[16,64], index: 3, kind: output, shape index: {}]  }
   0x1   :  { %s575_s14 = smov 0  }
   0x2 LB: > { %s32_s15 = sadd.s32 1, %s542_s13  ;;  %p468_p0 = scmp.ge.s32.totalorder %s546_s14, 1  ;;  %s546_s14 = sphi %s575_s14, %s13_s14   ;;  %s542_s13 = sphi %s573_s13, %s627_s13   ;;  %s538_s12 = sphi %s571_s12, %s626_s12  }
   0x3   : > { %p34_p1 = scmp.ge.s32.totalorder %s32_s15, 2  ;;  %p186_p2 = scmp.lt.s32.totalorder %s546_s14, 3 }
   0x5   : > { %s629_s15 = smov (%p34_p1, %s32_s15), 0  ;;  %p187_p3 = pnand %p468_p0, %p186_p2 }
   0x6   : > { %v259_v0 = vld [vmem:[%s623_s1] sm:$0xff] (!%p187_p3)  ;;  %v260_v1 = vld [vmem:[%s623_s1 + $0x8] sm:$0xff] (!%p187_p3)  ;;  %v261_v2 = vld [vmem:[%s623_s1 + $0x10] sm:$0xff] (!%p187_p3)  ;;  %vm255_vm0 = vcmask (!%p187_p3), 523264   ;;  %v548_v3 = vmov (!%p187_p3), 0.0|0.0   ;;  %v549_v6 = vmov (!%p187_p3), 0.0  }
   0x7   : > { %190 = sbr.rel (%p187_p3) target bundleno = 245 (0xf5), region = 32  ;;  %491 = vmatprep.subr.bf16.mxu0 (!%p187_p3), %v548_v3  ;;  %v492_v4 = vpack.c.bf16 (!%p187_p3), %v260_v1, %v259_v0  ;;  %v262_v5 = vld [vmem:[%s623_s1 + $0x18] sm:$0xff] (!%p187_p3)  ;;  %256 = vst.msk [vmem:[#allocation2] sm:$0xff] (!%p187_p3), %vm255_vm0, %v549_v6  ;;  %p225_p4 = scmp.lt.s32.totalorder (!%p187_p3), %s538_s12, 1  ;;  %vm550_vm1 = vmmov (!%p187_p3), 0   ;;  %vm263_vm2 = vcmask (!%p187_p3), 261120  }
   0x8   : > { %488 = vmatprep.mubr.msk.f32.mxu0 (!%p187_p3), %vm550_vm1, %v549_v6  ;;  %v495_v7 = vpack.c.bf16 (!%p187_p3), %v262_v5, %v261_v2  ;;  %v472_v13 = vld [vmem:[%s624_s2] ss:$0 sm:$0xff] (!%p187_p3) }
   0x9   : > { %493 = vmatpush3.bf16.msra.mxu0 (!%p187_p3), %v492_v4 }
   0xa   : > { %494 = vmatprep.subr.bf16.mxu0 (!%p187_p3), %v548_v3 }
   0xd   : > { %496 = vmatpush3.bf16.msra.mxu0 (!%p187_p3), %v495_v7 }
   0xe   : > { %s631_s12 = smov (!%p225_p4, %s538_s12), 1  ;;  %v257_v9 = vld [vmem:[#allocation2] sm:$0xff] }
   0xf   : > { %s469_s24 = sshll.u32 %s631_s12, 3 }
  0x10   : > { %s231_s27 = scalar_lea.vmem %s622_s0, %s469_s24  ;;  %s250_s5 = scalar_lea.vmem %s625_s3, %s469_s24 }
  0x11   : > { %v258_v8 = vld [vmem:[%s231_s27] sm:$0xff] }
  0x12   : > { %489 = vmatmul.mubr.msk.f32.vlgmr.msra.gmra.mrb[0].mxu0 %vm263_vm2, %v258_v8 }
  0xe5   : > { %v333_v10 = vpop.f32.mrb[0].mxu0 }
  0xe6   : > { %v337_v11 = vadd.f32 %v333_v10, %v257_v9  ;;  %v490_v12 = vpop.f32.mrb[1].mxu0 }
  0xe8   : > { %339 = vst.msk [vmem:[#allocation2] sm:$0xff] %vm255_vm0, %v337_v11 }
  0xef   : > { %v343_v14 = vld [vmem:[#allocation2] sm:$0xff] }
  0xf0   : > { %v351_v15 = vadd.f32 %v472_v13, %v343_v14 }
  0xf2   : > { %v352_v16 = vmax.f32 %v351_v15, 0.0 }
  0xf4   : > { %353 = vst.msk [vmem:[%s250_s5] sm:$0xff] %vm255_vm0, %v352_v16 }
  0xf5 PF: > { %s13_s14 = sadd.s32 1, %s546_s14   ;;  %s626_s12 = smov %s542_s13 }
  0xf6   : > { %p10_p5 = scmp.ge.s32.totalorder %s13_s14, 4   ;;  %s627_s13 = smov %s629_s15 }
  0xf8   :  { %12 = sbr.rel (!%p10_p5) target bundleno = 2 (0x2), region = 76 }

// kernel: decoder_forward_pallas.26
= control target key start
LH: loop header
LB: loop body
LE: loop exit
PB: predicated region body
PF: predicated region fallthrough
CT: control target
= control target key end

     0   :  { %s1345_s12 = smov 0   ;;  %s1347_s13 = smov 0   ;;  %s1472_s0 = inlined_call_operand.vmem [shape: f32[2,8,32], index: 0, kind: input, shape index: {}]   ;;  %s1473_s1 = inlined_call_operand.vmem [shape: f32[2,16,64], index: 1, kind: input, shape index: {}]   ;;  %s1474_s2 = inlined_call_operand.vmem [shape: f32[2,8,16], index: 2, kind: input, shape index: {}]   ;;  %s1475_s3 = inlined_call_operand.vmem [shape: f32[2,8,32], index: 3, kind: output, shape index: {}]  }
   0x1   :  { %s1349_s14 = smov 0  }
   0x2 LB: > { %s25_s15 = sadd.s32 1, %s1306_s13  ;;  %p1067_p0 = scmp.ge.s32.totalorder %s1310_s14, 1  ;;  %s1310_s14 = sphi %s1349_s14, %s13_s14   ;;  %s1306_s13 = sphi %s1347_s13, %s1479_s13   ;;  %s1302_s12 = sphi %s1345_s12, %s1478_s12  }
   0x3   : > { %p27_p1 = scmp.ge.s32.totalorder %s25_s15, 2  ;;  %p179_p2 = scmp.lt.s32.totalorder %s1310_s14, 3 }
   0x5   : > { %s1481_s15 = smov (%p27_p1, %s25_s15), 0  ;;  %p180_p3 = pnand %p1067_p0, %p179_p2 }
   0x6   : > { %p219_p4 = scmp.lt.s32.totalorder (!%p180_p3), %s1302_s12, 1  ;;  %v1312_v0 = vmov (!%p180_p3), 0.0|0.0   ;;  %vm1313_vm0 = vmmov (!%p180_p3), 0   ;;  %v1314_v1 = vmov (!%p180_p3), 0.0   ;;  %vm249_vm1 = vcmask (!%p180_p3), 64512   ;;  %s1315_s27 = smov (!%p180_p3), 96  }
   0x7   : > { %183 = sbr.rel (%p180_p3) target bundleno = 2500 (0x9c4), region = 32  ;;  %1172 = vmatprep.subr.bf16.mxu0 (!%p180_p3), %v1312_v0  ;;  %1120 = vmatprep.mubr.msk.f32.mxu0 (!%p180_p3), %vm1313_vm0, %v1314_v1  ;;  %vm1374_vm2 = vmpackc.low (!%p180_p3), %vm249_vm1, %vm249_vm1  ;;  %vm331_vm3 = vcmask (!%p180_p3), 130048   ;;  %s1316_s28 = smov (!%p180_p3), 120   ;;  %vm958_vm4 = vcmask (!%p180_p3), 195584   ;;  %vm960_vm5 = vcmask (!%p180_p3), 261120  }
   0x8   : > { %1176 = vmatprep.subr.bf16.mxu1 (!%p180_p3), %v1312_v0  ;;  %1127 = vmatprep.mubr.msk.f32.mxu1 (!%p180_p3), %vm1313_vm0, %v1314_v1  ;;  %s1317_s29 = smov (!%p180_p3), 88   ;;  %s1318_s30 = smov (!%p180_p3), 112  }
   0x9   : > { %s1319_s4 = smov (!%p180_p3), 80   ;;  %s1320_s5 = smov (!%p180_p3), 104  }
   0xa   : > { %s1321_s6 = smov (!%p180_p3), 72   ;;  %s1322_s7 = smov (!%p180_p3), 16  }
   0xb   : > { %s1323_s8 = smov (!%p180_p3), 8   ;;  %s1324_s9 = smov (!%p180_p3), 24  }
   0xe   : > { %s1483_s12 = smov (!%p219_p4, %s1302_s12), 1 }
   0xf   : > { %s1091_s16 = sshll.u32 %s1483_s12, 4  ;;  %s1378_s20 = sshll.u32 %s1483_s12, 3 }
  0x10   : > { %s230_s19 = scalar_lea.vmem %s1473_s1, %s1091_s16  ;;  %s225_s23 = scalar_lea.vmem %s1472_s0, %s1378_s20 }
  0x11   : > { %v246_v2 = vld [vmem:[%s230_s19] sm:$0xff]  ;;  %v247_v3 = vld [vmem:[%s230_s19 + $0x8] sm:$0xff]  ;;  %s237_s26 = scalar_lea.vmem %s1474_s2, %s1378_s20  ;;  %s244_s12 = scalar_lea.vmem %s1475_s3, %s1378_s20 }
  0x12   : > { %v1173_v5 = vpack.c.bf16 %v247_v3, %v246_v2  ;;  %v1387_v6 = vld [vmem:[%s225_s23] sm:$0xff]  ;;  %v1401_v13 = vpack.i.bf16 %v247_v3, %v246_v2 }
  0x13   : > { %v1397_v8 = vld [vmem:[%s237_s26] sm:$0xff] }
  0x14   : > { %1175 = vmatpush3.bf16.xpose.msk.msra.mxu0 %vm1374_vm2, %v1173_v5  ;;  %1238 = vrot.lane.b32.xlu1 %v1401_v13, %s1315_s27 }
  0x15   : > { %1183 = vmatprep.subr.bf16.mxu0 %v1312_v0 }
  0x18   : > { %1243 = vrot.lane.b32.xlu1 %v1401_v13, %s1316_s28 }
  0x1b   : > { %1121 = vmatmul.mubr.msk.f32.vlgmr.msra.gmra.mrb[0].mxu0 %vm249_vm1, %v1387_v6 }
  0x1c   : > { %1141 = vmatprep.mubr.msk.f32.mxu0 %vm1313_vm0, %v1314_v1 }
  0x86   : > { %v1239_v19 = vpop.permute.xlu1 %1238 }
  0x87   : > { %v1241_v20 = vunpack.i.h.bf16 %v1239_v19  ;;  %v1240_v21 = vunpack.i.l.bf16 %v1239_v19 }
  0x89   : > { %v1177_v22 = vpack.c.bf16 %v1241_v20, %v1240_v21 }
  0x8a   : > { %v1244_v24 = vpop.permute.xlu1 %1243 }
  0x8b   : > { %1178 = vmatpush3.bf16.msra.mxu1 %v1177_v22  ;;  %v1246_v25 = vunpack.i.h.bf16 %v1244_v24  ;;  %v1245_v26 = vunpack.i.l.bf16 %v1244_v24 }
  0x8c   : > { %1179 = vmatprep.subr.bf16.mxu1 %v1312_v0 }
  0x8d   : > { %v1180_v28 = vpack.c.bf16 %v1246_v25, %v1245_v26 }
  0xee   : > { %v325_v7 = vpop.f32.mrb[0].mxu0 }
  0xef   : > { %v329_v9 = vmul.f32 0.35355338, %v325_v7  ;;  %v1122_v10 = vpop.f32.mrb[1].mxu0 }
  0xf1   : > { %v330_v11 = vadd.f32 %v329_v9, %v1397_v8 }
  0xf3   : > { %v332_v12 = vsel %vm331_vm3, %v330_v11, -inf }
  0xf4   : > { %333 = vmax.xlane.f32.xlu0 %v332_v12 }
 0x181   : > { %v334_v14 = vpop.xlane.xlu0 %333 }
 0x182   : > { %v335_v15 = vsub.f32 %v330_v11, %v334_v14 }
 0x184   : > { %v336_v16 = vmul.f32 1.442695, %v335_v15 }
 0x186   : > { %1272 = vpow2.f32 %v336_v16 }
 0x190   : > { %v1273_v17 = vpop.eup %1272 }
 0x191   : > { %v338_v18 = vsel %vm331_vm3, %v1273_v17, 0.0 }
 0x192   : > { %339 = vadd.xlane.f32.xlu0 %v338_v18 }
 0x1a8   : > { %422 = vrot.lane.b32.xlu0 %v1387_v6, %s1316_s28 }
 0x21f   : > { %v340_v23 = vpop.xlane.xlu0 %339 }
 0x220   : > { %1274 = vrcp.f32 %v340_v23 }
 0x223   : > { %v423_v30 = vpop.permute.xlu0 %422 }
 0x22a   : > { %v1275_v27 = vpop.eup %1274 }
 0x22b   : > { %v342_v29 = vmul.f32 %v1275_v27, %v1273_v17 }
 0x22d   : > { %1128 = vmatmul.mubr.msk.f32.vlgmr.msra.gmra.mrb[0].mxu1 %vm331_vm3, %v342_v29 }
 0x22e   : > { %1182 = vmatpush3.bf16.xpose.msk.msra.mxu1 %vm1374_vm2, %v1180_v28  ;;  %1134 = vmatprep.mubr.msk.f32.mxu1 %vm1313_vm0, %v1314_v1 }
 0x22f   : > { %1190 = vmatprep.subr.bf16.mxu1 %v1312_v0 }
 0x235   : > { %1135 = vmatmul.mubr.msk.f32.vlgmr.msra.gmra.mrb[2].mxu1 %vm249_vm1, %v423_v30 }
 0x236   : > { %1155 = vmatprep.mubr.msk.f32.mxu1 %vm1313_vm0, %v1314_v1 }
 0x300   : > { %v1417_v31 = vpop.f32.mrb[0].mxu1 }
 0x301   : > { %v1129_v32 = vpop.f32.mrb[1].mxu1 }
 0x308   : > { %v500_v33 = vpop.f32.mrb[2].mxu1 }
 0x309   : > { %v504_v34 = vmul.f32 0.35355338, %v500_v33  ;;  %v1136_v35 = vpop.f32.mrb[3].mxu1 }
 0x30b   : > { %v505_v36 = vadd.f32 %v504_v34, %v1397_v8 }
 0x30d   : > { %v506_v37 = vsel %vm331_vm3, %v505_v36, -inf }
 0x30e   : > { %507 = vmax.xlane.f32.xlu1 %v506_v37 }
 0x31f   : > { %1248 = vrot.lane.b32.xlu1 %v1401_v13, %s1317_s29 }
 0x323   : > { %596 = vrot.lane.b32.xlu1 %v1387_v6, %s1318_s30 }
 0x39b   : > { %v508_v38 = vpop.xlane.xlu1 %507 }
 0x39c   : > { %v509_v39 = vsub.f32 %v505_v36, %v508_v38 }
 0x39e   : > { %v510_v40 = vmul.f32 1.442695, %v509_v39 }
 0x39f   : > { %v1249_v43 = vpop.permute.xlu1 %1248 }
 0x3a0   : > { %1276 = vpow2.f32 %v510_v40  ;;  %v1251_v44 = vunpack.i.h.bf16 %v1249_v43  ;;  %v1250_v45 = vunpack.i.l.bf16 %v1249_v43 }
 0x3a2   : > { %v1184_v46 = vpack.c.bf16 %v1251_v44, %v1250_v45 }
 0x3a3   : > { %v597_v54 = vpop.permute.xlu1 %596 }
 0x3a4   : > { %1185 = vmatpush3.bf16.msra.mxu0 %v1184_v46 }
 0x3a5   : > { %1186 = vmatprep.subr.bf16.mxu0 %v1312_v0 }
 0x3aa   : > { %v1277_v41 = vpop.eup %1276 }
 0x3ab   : > { %v512_v42 = vsel %vm331_vm3, %v1277_v41, 0.0 }
 0x3ac   : > { %513 = vadd.xlane.f32.xlu0 %v512_v42 }
 0x3c2   : > { %1253 = vrot.lane.b32.xlu0 %v1401_v13, %s1318_s30 }
 0x439   : > { %v514_v47 = vpop.xlane.xlu0 %513 }
 0x43a   : > { %1278 = vrcp.f32 %v514_v47 }
 0x43d   : > { %v1254_v48 = vpop.permute.xlu0 %1253 }
 0x43e   : > { %v1256_v49 = vunpack.i.h.bf16 %v1254_v48  ;;  %v1255_v50 = vunpack.i.l.bf16 %v1254_v48 }
 0x440   : > { %v1187_v52 = vpack.c.bf16 %v1256_v49, %v1255_v50 }
 0x444   : > { %v1279_v51 = vpop.eup %1278 }
 0x445   : > { %v516_v53 = vmul.f32 %v1279_v51, %v1277_v41 }
 0x447   : > { %1142 = vmatmul.mubr.msk.f32.vlgmr.msra.gmra.mrb[2].mxu0 %vm331_vm3, %v516_v53 }
 0x448   : > { %1189 = vmatpush3.bf16.xpose.msk.msra.mxu0 %vm1374_vm2, %v1187_v52  ;;  %1148 = vmatprep.mubr.msk.f32.mxu0 %vm1313_vm0, %v1314_v1 }
 0x449   : > { %1197 = vmatprep.subr.bf16.mxu0 %v1312_v0 }
 0x44f   : > { %1149 = vmatmul.mubr.msk.f32.vlgmr.msra.gmra.mrb[4].mxu0 %vm249_vm1, %v597_v54 }
 0x450   : > { %1169 = vmatprep.mubr.msk.f32.mxu0 %vm1313_vm0, %v1314_v1 }
 0x51a   : > { %v1435_v55 = vpop.f32.mrb[2].mxu0 }
 0x51b   : > { %v1143_v56 = vpop.f32.mrb[3].mxu0 }
 0x522   : > { %v674_v57 = vpop.f32.mrb[4].mxu0 }
 0x523   : > { %v678_v58 = vmul.f32 0.35355338, %v674_v57  ;;  %v1150_v59 = vpop.f32.mrb[5].mxu0 }
 0x525   : > { %v679_v60 = vadd.f32 %v678_v58, %v1397_v8 }
 0x527   : > { %v680_v61 = vsel %vm331_vm3, %v679_v60, -inf }
 0x528   : > { %681 = vmax.xlane.f32.xlu1 %v680_v61 }
 0x539   : > { %1258 = vrot.lane.b32.xlu1 %v1401_v13, %s1319_s4 }
 0x53d   : > { %770 = vrot.lane.b32.xlu1 %v1387_v6, %s1320_s5 }
 0x5b5   : > { %v682_v62 = vpop.xlane.xlu1 %681 }
 0x5b6   : > { %v683_v63 = vsub.f32 %v679_v60, %v682_v62 }
 0x5b8   : > { %v684_v2 = vmul.f32 1.442695, %v683_v63 }
 0x5b9   : > { %v1259_v7 = vpop.permute.xlu1 %1258 }
 0x5ba   : > { %1280 = vpow2.f32 %v684_v2  ;;  %v1261_v9 = vunpack.i.h.bf16 %v1259_v7  ;;  %v1260_v10 = vunpack.i.l.bf16 %v1259_v7 }
 0x5bc   : > { %v1191_v11 = vpack.c.bf16 %v1261_v9, %v1260_v10 }
 0x5bd   : > { %v771_v19 = vpop.permute.xlu1 %770 }
 0x5be   : > { %1192 = vmatpush3.bf16.msra.mxu1 %v1191_v11 }
 0x5bf   : > { %1193 = vmatprep.subr.bf16.mxu1 %v1312_v0 }
 0x5c4   : > { %v1281_v3 = vpop.eup %1280 }
 0x5c5   : > { %v686_v5 = vsel %vm331_vm3, %v1281_v3, 0.0 }
 0x5c6   : > { %687 = vadd.xlane.f32.xlu0 %v686_v5 }
 0x5dc   : > { %1263 = vrot.lane.b32.xlu0 %v1401_v13, %s1320_s5 }
 0x653   : > { %v688_v12 = vpop.xlane.xlu0 %687 }
 0x654   : > { %1282 = vrcp.f32 %v688_v12 }
 0x657   : > { %v1264_v6 = vpop.permute.xlu0 %1263 }
 0x658   : > { %v1266_v14 = vunpack.i.h.bf16 %v1264_v6  ;;  %v1265_v15 = vunpack.i.l.bf16 %v1264_v6 }
 0x65a   : > { %v1194_v17 = vpack.c.bf16 %v1266_v14, %v1265_v15 }
 0x65e   : > { %v1283_v16 = vpop.eup %1282 }
 0x65f   : > { %v690_v18 = vmul.f32 %v1283_v16, %v1281_v3 }
 0x661   : > { %1156 = vmatmul.mubr.msk.f32.vlgmr.msra.gmra.mrb[4].mxu1 %vm331_vm3, %v690_v18 }
 0x662   : > { %1196 = vmatpush3.bf16.xpose.msk.msra.mxu1 %vm1374_vm2, %v1194_v17  ;;  %1162 = vmatprep.mubr.msk.f32.mxu1 %vm1313_vm0, %v1314_v1 }
 0x669   : > { %1163 = vmatmul.mubr.msk.f32.vlgmr.msra.gmra.mrb[6].mxu1 %vm249_vm1, %v771_v19 }
 0x734   : > { %v766_v0 = vpop.f32.mrb[4].mxu1 }
 0x735   : > { %v1157_v20 = vpop.f32.mrb[5].mxu1 }
 0x73c   : > { %v848_v21 = vpop.f32.mrb[6].mxu1 }
 0x73d   : > { %v852_v22 = vmul.f32 0.35355338, %v848_v21  ;;  %v1164_v23 = vpop.f32.mrb[7].mxu1 }
 0x73f   : > { %v853_v24 = vadd.f32 %v852_v22, %v1397_v8 }
 0x741   : > { %v854_v25 = vsel %vm331_vm3, %v853_v24, -inf }
 0x742   : > { %855 = vmax.xlane.f32.xlu1 %v854_v25 }
 0x753   : > { %1268 = vrot.lane.b32.xlu1 %v1401_v13, %s1321_s6 }
 0x757   : > { %949 = vrot.lane.b32.xlu1 %v766_v0, %s1322_s7 }
 0x7cf   : > { %v856_v4 = vpop.xlane.xlu1 %855 }
 0x7d0   : > { %v857_v1 = vsub.f32 %v853_v24, %v856_v4 }
 0x7d2   : > { %v858_v26 = vmul.f32 1.442695, %v857_v1 }
 0x7d3   : > { %v1269_v27 = vpop.permute.xlu1 %1268 }
 0x7d4   : > { %1284 = vpow2.f32 %v858_v26  ;;  %v1271_v28 = vunpack.i.h.bf16 %v1269_v27  ;;  %v1270_v29 = vunpack.i.l.bf16 %v1269_v27 }
 0x7d6   : > { %v1198_v30 = vpack.c.bf16 %v1271_v28, %v1270_v29 }
 0x7d7   : > { %v950_v38 = vpop.permute.xlu1 %949 }
 0x7d8   : > { %1199 = vmatpush3.bf16.msra.mxu0 %v1198_v30 }
 0x7de   : > { %v1285_v32 = vpop.eup %1284 }
 0x7df   : > { %v860_v8 = vsel %vm331_vm3, %v1285_v32, 0.0 }
 0x7e0   : > { %861 = vadd.xlane.f32.xlu0 %v860_v8 }
 0x7f6   : > { %945 = vrot.lane.b32.xlu0 %v1435_v55, %s1323_s8 }
 0x86d   : > { %v862_v13 = vpop.xlane.xlu0 %861 }
 0x86e   : > { %1286 = vrcp.f32 %v862_v13 }
 0x871   : > { %v946_v37 = vpop.permute.xlu0 %945 }
 0x872   : > { %v956_v39 = vsel %vm249_vm1, %v1417_v31, %v946_v37 }
 0x873   : > { %v957_v40 = vsel %vm331_vm3, %v956_v39, %v950_v38 }
 0x878   : > { %v1287_v33 = vpop.eup %1286 }
 0x879   : > { %v864_v34 = vmul.f32 %v1287_v33, %v1285_v32 }
 0x87b   : > { %1170 = vmatmul.mubr.msk.f32.vlgmr.msra.gmra.mrb[6].mxu0 %vm331_vm3, %v864_v34 }
 0x94e   : > { %v940_v35 = vpop.f32.mrb[6].mxu0 }
 0x94f   : > { %953 = vrot.lane.b32.xlu1 %v940_v35, %s1324_s9  ;;  %v1171_v36 = vpop.f32.mrb[7].mxu0 }
 0x9c1   : > { %v954_v41 = vpop.permute.xlu1 %953 }
 0x9c2   : > { %v959_v42 = vsel %vm958_vm4, %v957_v40, %v954_v41 }
 0x9c3   : > { %961 = vst.msk [vmem:[%s244_s12] sm:$0xff] %vm960_vm5, %v959_v42 }
 0x9c4 PF: > { %s13_s14 = sadd.s32 1, %s1310_s14   ;;  %s1478_s12 = smov %s1306_s13 }
 0x9c5   : > { %p10_p5 = scmp.ge.s32.totalorder %s13_s14, 4   ;;  %s1479_s13 = smov %s1481_s15 }
 0x9c7   :  { %12 = sbr.rel (!%p10_p5) target bundleno = 2 (0x2), region = 68 }

// kernel: decoder_forward_pallas.39
= control target key start
LH: loop header
LB: loop body
LE: loop exit
PB: predicated region body
PF: predicated region fallthrough
CT: control target
= control target key end

     0   :  { %8 = vsyncpa [#allocation4], 0  ;;  %s795_s0 = inlined_call_operand.vmem [shape: f32[16,32], index: 0, kind: input, shape index: {}]   ;;  %s796_s1 = inlined_call_operand.vmem [shape: f32[32,50], index: 1, kind: input, shape index: {}]   ;;  %s797_s2 = inlined_call_operand.vmem [shape: f32[1,50], index: 2, kind: input, shape index: {}]   ;;  %s798_s3 = inlined_call_operand.hbm [shape: f32[16,50], index: 3, kind: output, shape index: {}]  }
   0x1   :  { %10 = vsyncpa [#allocation4 + $0x1], 0  ;;  %s665_s12 = smov 0   ;;  %s667_s13 = smov 0  }
   0x2   :  { %s669_s14 = smov 0   ;;  %s671_s15 = smov 0  }
   0x3   :  { %s673_s16 = smov 0   ;;  %s675_s17 = smov 0  }
   0x4 LB: > { %s466_s18 = sadd.s32 4294967295, %s639_s17   ;;  %s467_s19 = sadd.s32 4294967294, %s639_s17   ;;  %s639_s17 = sphi %s675_s17, %s16_s17   ;;  %s635_s16 = sphi %s673_s16, %s805_s16   ;;  %s631_s15 = sphi %s671_s15, %s804_s15   ;;  %s627_s14 = sphi %s669_s14, %s803_s14   ;;  %s623_s13 = sphi %s667_s13, %s802_s13   ;;  %s619_s12 = sphi %s665_s12, %s801_s12  }
   0x5   : > { %s35_s20 = sadd.s32 1, %s635_s16  ;;  %s126_s21 = sadd.s32 1, %s627_s14 }
   0x6   : > { %p37_p0 = scmp.ge.s32.totalorder %s35_s20, 2  ;;  %p136_p1 = scmp.ne.s32.totalorder %s627_s14, %s623_s13 }
   0x7   : > { %p137_p2 = scmp.eq.s32.totalorder %s466_s18, 1  ;;  %p142_p3 = scmp.ne.s32.totalorder %s623_s13, %s619_s12 }
   0x8   : > { %s807_s20 = smov (%p37_p0, %s35_s20), 0  ;;  %p143_p5 = scmp.eq.s32.totalorder %s467_s19, 1 }
   0x9   : > { %p705_p4 = por %p137_p2, %p136_p1  ;;  %s121_s23 = ssub.s32 %s635_s16, %s807_s20 }
   0xa   : > { %p472_p6 = scmp.ge.s32.totalorder %s639_s17, 1  ;;  %p124_p7 = scmp.eq.s32.totalorder %s121_s23, 0 }
   0xb   : > { %p712_p8 = por %p143_p5, %p142_p3  ;;  %p189_p9 = scmp.lt.s32.totalorder %s639_s17, 3 }
   0xc   : > { %s718_s25 = scalar_select %p124_p7, %s627_s14, %s126_s21  }
   0xd   : > { %p190_p10 = pnand %p472_p6, %p189_p9 }
   0xe   : > { %v253_v0 = vld [vmem:[%s796_s1] sm:$0xff] (!%p190_p10)  ;;  %v254_v1 = vld [vmem:[%s796_s1 + $0x8] sm:$0xff] (!%p190_p10)  ;;  %v255_v2 = vld [vmem:[%s796_s1 + $0x10] sm:$0xff] (!%p190_p10)  ;;  %vm249_vm0 = vcmask (!%p190_p10), 408576   ;;  %v641_v3 = vmov (!%p190_p10), 0.0|0.0   ;;  %v642_v6 = vmov (!%p190_p10), 0.0  }
   0xf   : > { %193 = sbr.rel (%p190_p10) target bundleno = 265 (0x109), region = 32  ;;  %497 = vmatprep.subr.bf16.mxu0 (!%p190_p10), %v641_v3  ;;  %v498_v4 = vpack.c.bf16 (!%p190_p10), %v254_v1, %v253_v0  ;;  %v256_v5 = vld [vmem:[%s796_s1 + $0x18] sm:$0xff] (!%p190_p10)  ;;  %250 = vst.msk [vmem:[#allocation2] sm:$0xff] (!%p190_p10), %vm249_vm0, %v642_v6  ;;  %p226_p11 = scmp.lt.s32.totalorder (!%p190_p10), %s631_s15, 1  ;;  %vm643_vm1 = vmmov (!%p190_p10), 0   ;;  %vm257_vm2 = vcmask (!%p190_p10), 261120  }
  0x10   : > { %494 = vmatprep.mubr.msk.f32.mxu0 (!%p190_p10), %vm643_vm1, %v642_v6  ;;  %v501_v7 = vpack.c.bf16 (!%p190_p10), %v256_v5, %v255_v2  ;;  %s223_s18 = sand.u32 (!%p190_p10), 1, %s623_s13   ;;  %v476_v13 = vld [vmem:[%s797_s2] ss:$0 sm:$0xff] (!%p190_p10)  ;;  %s478_s26 = sshll.u32 (!%p190_p10), %s631_s15, 7 }
  0x11   : > { %499 = vmatpush3.bf16.msra.mxu0 (!%p190_p10), %v498_v4  ;;  %s473_s19 = sshll.u32 (!%p190_p10), %s223_s18, 3  ;;  %s747_s4 = scalar_lea.hbm (!%p190_p10), %s798_s3, %s478_s26 }
  0x12   : > { %500 = vmatprep.subr.bf16.mxu0 (!%p190_p10), %v641_v3  ;;  %s225_s27 = scalar_lea.vmem (!%p190_p10), [#allocation3], %s473_s19  ;;  %s348_s5 = scalar_lea.sflag (!%p190_p10), [#allocation4], %s223_s18 }
  0x13   : > { %s362_s28 = sshll.u32 (!%p190_p10), %s225_s27, 4  ;;  %s749_s28 = int_to_ptr.vmem [resolvable:$true] %s362_s28 }
  0x14   : > { %s561_s6 = scalar_lea.vmem (!%p190_p10), %s749_s28, 128 }
  0x15   : > { %502 = vmatpush3.bf16.msra.mxu0 (!%p190_p10), %v501_v7  ;;  %p562_p12 = scmp.ne.s32.totalorder (!%p190_p10), %s749_s28, %s561_s6 }
  0x16   : > { %s227_s7 = scalar_select %p226_p11, %s631_s15, 1  ;;  %v251_v9 = vld [vmem:[#allocation2] sm:$0xff] }
  0x17   : > { %p563_p13 = pnand %p562_p12, %p705_p4  ;;  %s644_s15 = smov [#allocation3]  }
  0x18   : > { %s474_s8 = sshll.u32 %s227_s7, 3  ;;  %s565_s7 = sshll.u32 %s644_s15, 4  ;;  %s566_s7 = int_to_ptr.vmem [resolvable:$false] %s565_s7 }
  0x19   : > { %s232_s11 = scalar_lea.vmem %s795_s0, %s474_s8  ;;  %p564_p0 = pneg %p563_p13 }
  0x1a   : > { %v252_v8 = vld [vmem:[%s232_s11] sm:$0xff]  ;;  %s567_s8 = scalar_lea.vmem %s566_s7, 256  ;;  %p568_p1 = scmp.lt.s32.totalorder %s749_s28, %s566_s7 }
  0x1b   : > { %495 = vmatmul.mubr.msk.f32.vlgmr.msra.gmra.mrb[0].mxu0 %vm257_vm2, %v252_v8  ;;  %p569_p2 = scmp.lt.s32.totalorder %s567_s8, %s561_s6 }
  0x1d   : > { %p570_p3 = por %p569_p2, %p568_p1 }
  0x1f   : > { %p571_p5 = pnand %p570_p3, %p564_p0 }
  0xee   : > { %v327_v10 = vpop.f32.mrb[0].mxu0 }
  0xef   : > { %v331_v11 = vadd.f32 %v327_v10, %v251_v9  ;;  %v496_v12 = vpop.f32.mrb[1].mxu0 }
  0xf1   : > { %333 = vst.msk [vmem:[#allocation2] sm:$0xff] %vm249_vm0, %v331_v11 }
  0xf8   : > { %v337_v14 = vld [vmem:[#allocation2] sm:$0xff] }
  0xf9   : > { %v345_v15 = vadd.f32 %v476_v13, %v337_v14 }
  0xfb   : > { %346 = vst.msk [vmem:[%s225_s27] sm:$0xff] %vm249_vm0, %v345_v15 }
  0xfc   : > { %574 = shalt.err (!%p571_p5)
}
  0xfd   : > { %s575_s9 = scalar_lea.hbm %s747_s4, 128  ;;  %s579_s18 = scalar_lea.hbm %s798_s3, 256 }
  0xfe   : > { %p576_p6 = scmp.ne.s32.totalorder %s747_s4, %s575_s9  ;;  %p580_p10 = scmp.lt.u32.totalorder %s747_s4, %s798_s3 }
  0xff   : > { %p581_p11 = scmp.lt.u32.totalorder %s579_s18, %s575_s9  ;;  %p583_p13 = scmp.lt.u32.totalorder %s575_s9, %s747_s4 }
 0x100   : > { %p577_p7 = pnand %p576_p6, %p705_p4 }
 0x101   : > { %p582_p12 = por %p581_p11, %p580_p10 }
 0x102   : > { %p578_p9 = pneg %p577_p7 }
 0x103   : > { %p584_p0 = por %p583_p13, %p582_p12 }
 0x105   : > { %p585_p1 = pnand %p584_p0, %p578_p9 }
 0x107   : > { %588 = shalt.err (!%p585_p1)
}
 0x108   : > { %503 = dma.vmem_to_hbm [thread:$0]  (%p705_p4), %s749_s28, 128, %s747_s4, %s348_s5  }
 0x109 PF: > { %p509_p2 = scmp.ge.s32.totalorder %s639_s17, 2  ;;  %s374_s23 = sand.u32 1, %s619_s12  }
 0x10a   : > { %s375_s26 = scalar_lea.sflag [#allocation4], %s374_s23 }
 0x10b   : > { %p506_p3 = pnand %p509_p2, %p712_p8 }
 0x10d   : > { %614 = dma.done.wait (!%p506_p3), %s375_s26, 128  }
 0x10e   : > { %616 = vsyncadd (!%p506_p3), %s375_s26, 4294967168  ;;  %s16_s17 = sadd.s32 1, %s639_s17   ;;  %s801_s12 = smov %s623_s13 }
 0x10f   : > { %p13_p5 = scmp.ge.s32.totalorder %s16_s17, 4   ;;  %s802_s13 = smov %s627_s14 }
 0x110   : > { %s803_s14 = smov %s718_s25  ;;  %s804_s15 = smov %s635_s16 }
 0x111   : > { %s805_s16 = smov %s807_s20  ;;  %15 = sbr.rel (!%p13_p5) target bundleno = 4 (0x4), region = 81 }
 0x118   :  { %380 = vsyncpa [#allocation4], 1 }
 0x119   :  { %382 = vsyncpa [#allocation4 + $0x1], 1 }

// kernel: decoder_forward_pallas.29
= control target key start
LH: loop header
LB: loop body
LE: loop exit
PB: predicated region body
PF: predicated region fallthrough
CT: control target
= control target key end

     0   :  { %s685_s21 = smov 0   ;;  %s687_s22 = smov 0   ;;  %s764_s0 = inlined_call_operand.vmem [shape: f32[16,64], index: 0, kind: input, shape index: {}]   ;;  %s765_s1 = inlined_call_operand.vmem [shape: f32[64,32], index: 1, kind: input, shape index: {}]   ;;  %s766_s2 = inlined_call_operand.vmem [shape: f32[1,32], index: 2, kind: input, shape index: {}]   ;;  %s767_s3 = inlined_call_operand.vmem [shape: f32[16,32], index: 3, kind: input, shape index: {}]   ;;  %s768_s4 = inlined_call_operand.vmem [shape: f32[1,32], index: 4, kind: input, shape index: {}]   ;;  %s769_s5 = inlined_call_operand.vmem [shape: f32[1,32], index: 5, kind: input, shape index: {}]   ;;  %s770_s6 = inlined_call_operand.vmem [shape: f32[16,32], index: 6, kind: output, shape index: {}]  }
   0x1   :  { %s689_s23 = smov 0  }
   0x2 LB: > { %s28_s24 = sadd.s32 1, %s641_s22  ;;  %p544_p0 = scmp.ge.s32.totalorder %s645_s23, 1  ;;  %s645_s23 = sphi %s689_s23, %s16_s23   ;;  %s641_s22 = sphi %s687_s22, %s772_s22   ;;  %s637_s21 = sphi %s685_s21, %s771_s21  }
   0x3   : > { %p30_p1 = scmp.ge.s32.totalorder %s28_s24, 2  ;;  %p248_p2 = scmp.lt.s32.totalorder %s645_s23, 3 }
   0x5   : > { %s774_s24 = smov (%p30_p1, %s28_s24), 0  ;;  %p249_p3 = pnand %p544_p0, %p248_p2 }
   0x6   : > { %v317_v0 = vld [vmem:[%s765_s1] sm:$0xff] (!%p249_p3)  ;;  %v318_v1 = vld [vmem:[%s765_s1 + $0x8] sm:$0xff] (!%p249_p3)  ;;  %v319_v2 = vld [vmem:[%s765_s1 + $0x10] sm:$0xff] (!%p249_p3)  ;;  %vm313_vm0 = vcmask (!%p249_p3), 261120   ;;  %v647_v3 = vmov (!%p249_p3), 0.0|0.0   ;;  %v648_v6 = vmov (!%p249_p3), 0.0  }
   0x7   : > { %252 = sbr.rel (%p249_p3) target bundleno = 564 (0x234), region = 44  ;;  %582 = vmatprep.subr.bf16.mxu0 (!%p249_p3), %v647_v3  ;;  %v583_v4 = vpack.c.bf16 (!%p249_p3), %v318_v1, %v317_v0  ;;  %v320_v5 = vld [vmem:[%s765_s1 + $0x18] sm:$0xff] (!%p249_p3)  ;;  %314 = vst.msk [vmem:[#allocation2] sm:$0xff] (!%p249_p3), %vm313_vm0, %v648_v6  ;;  %p288_p4 = scmp.lt.s32.totalorder (!%p249_p3), %s637_s21, 1  ;;  %vm649_vm1 = vmmov (!%p249_p3), 0   ;;  %v321_v8 = vld [vmem:[%s765_s1 + $0x20] sm:$0xff] (!%p249_p3) }
   0x8   : > { %579 = vmatprep.mubr.msk.f32.mxu0 (!%p249_p3), %vm649_vm1, %v648_v6  ;;  %v586_v7 = vpack.c.bf16 (!%p249_p3), %v320_v5, %v319_v2  ;;  %v322_v9 = vld [vmem:[%s765_s1 + $0x28] sm:$0xff] (!%p249_p3)  ;;  %v323_v11 = vld [vmem:[%s765_s1 + $0x30] sm:$0xff] (!%p249_p3)  ;;  %v324_v12 = vld [vmem:[%s765_s1 + $0x38] sm:$0xff] (!%p249_p3)  ;;  %vm325_vm2 = vcmask (!%p249_p3), 523264  }
   0x9   : > { %584 = vmatpush3.bf16.msra.mxu0 (!%p249_p3), %v583_v4  ;;  %v589_v10 = vpack.c.bf16 (!%p249_p3), %v322_v9, %v321_v8  ;;  %v592_v13 = vpack.c.bf16 (!%p249_p3), %v324_v12, %v323_v11  ;;  %v549_v19 = vld [vmem:[%s766_s2] ss:$0 sm:$0xff] (!%p249_p3) }
   0xa   : > { %585 = vmatprep.subr.bf16.mxu0 (!%p249_p3), %v647_v3  ;;  %v550_v34 = vld [vmem:[%s768_s4] ss:$0 sm:$0xff] (!%p249_p3) }
   0xb   : > { %v551_v36 = vld [vmem:[%s769_s5] ss:$0 sm:$0xff] (!%p249_p3) }
   0xd   : > { %587 = vmatpush3.bf16.msra.mxu0 (!%p249_p3), %v586_v7 }
   0xe   : > { %s776_s21 = smov (!%p288_p4, %s637_s21), 1  ;;  %588 = vmatprep.subr.bf16.mxu0 %v647_v3  ;;  %v315_v15 = vld [vmem:[#allocation2] sm:$0xff] }
   0xf   : > { %s728_s17 = sshll.u32 %s776_s21, 3 }
  0x10   : > { %s294_s20 = scalar_lea.vmem %s764_s0, %s728_s17  ;;  %s304_s26 = scalar_lea.vmem %s767_s3, %s728_s17 }
  0x11   : > { %590 = vmatpush3.bf16.msra.mxu0 %v589_v10  ;;  %v316_v14 = vld [vmem:[%s294_s20] sm:$0xff]  ;;  %s308_s11 = scalar_lea.vmem %s770_s6, %s728_s17 }
  0x12   : > { %591 = vmatprep.subr.bf16.mxu0 %v647_v3  ;;  %v414_v21 = vld [vmem:[%s304_s26] sm:$0xff] }
  0x15   : > { %593 = vmatpush3.bf16.msra.mxu0 %v592_v13 }
  0x18   : > { %580 = vmatmul.mubr.msk.f32.vlgmr.msra.gmra.mrb[0].mxu0 %vm325_vm2, %v316_v14 }
  0xeb   : > { %v395_v16 = vpop.f32.mrb[0].mxu0 }
  0xec   : > { %v399_v17 = vadd.f32 %v395_v16, %v315_v15  ;;  %v581_v18 = vpop.f32.mrb[1].mxu0 }
  0xee   : > { %401 = vst.msk [vmem:[#allocation2] sm:$0xff] %vm313_vm0, %v399_v17 }
  0xf5   : > { %v405_v20 = vld [vmem:[#allocation2] sm:$0xff] }
  0xf6   : > { %v413_v22 = vadd.f32 %v549_v19, %v405_v20 }
  0xf8   : > { %v415_v23 = vadd.f32 %v414_v21, %v413_v22 }
  0xfa   : > { %v416_v24 = vsel %vm313_vm0, %v415_v23, 0.0 }
  0xfb   : > { %417 = vadd.xlane.f32.xlu0 %v416_v24 }
 0x188   : > { %v418_v25 = vpop.xlane.xlu0 %417 }
 0x189   : > { %v420_v26 = vmul.f32 0.03125, %v418_v25 }
 0x18b   : > { %v421_v27 = vsub.f32 %v415_v23, %v420_v26 }
 0x18d   : > { %v422_v28 = vmul.f32 %v421_v27, %v421_v27 }
 0x18f   : > { %v423_v29 = vsel %vm313_vm0, %v422_v28, 0.0 }
 0x190   : > { %424 = vadd.xlane.f32.xlu0 %v423_v29 }
 0x21d   : > { %v425_v30 = vpop.xlane.xlu0 %424 }
 0x21e   : > { %v426_v31 = vmul.f32 0.03125, %v425_v30 }
 0x220   : > { %v427_v32 = vadd.f32 1e-05, %v426_v31 }
 0x222   : > { %621 = vrsqrt.f32 %v427_v32 }
 0x22c   : > { %v622_v33 = vpop.eup %621 }
 0x22d   : > { %v429_v35 = vmul.f32 %v622_v33, %v421_v27 }
 0x22f   : > { %v437_v37 = vmul.f32 %v550_v34, %v429_v35 }
 0x231   : > { %v445_v38 = vadd.f32 %v551_v36, %v437_v37 }
 0x233   : > { %446 = vst.msk [vmem:[%s308_s11] sm:$0xff] %vm313_vm0, %v445_v38 }
 0x234 PF: > { %s16_s23 = sadd.s32 1, %s645_s23   ;;  %s771_s21 = smov %s641_s22 }
 0x235   : > { %p13_p5 = scmp.ge.s32.totalorder %s16_s23, 4   ;;  %s772_s22 = smov %s774_s24 }
 0x237   :  { %15 = sbr.rel (!%p13_p5) target bundleno = 2 (0x2), region = 88 }

</bundles_post_ra>
